<compile_context>
chip_gen: v7x
topology: tpu7x:2x2x1
jax: 0.10.0
libtpu: 0.0.40
codegen_flags: <defaults>
</compile_context>

<pallas_src>
import functools

import jax
import jax.numpy as jnp
from jax.experimental import pallas as pl
from jax.experimental.pallas import tpu as pltpu


def _round_up(x, m):
    return (x + m - 1) // m * m


# ----------------------------------------------------------------------------
# Pallas kernel: entire VAE forward (8 fused matmuls + activations + reparam)
# ----------------------------------------------------------------------------
def _vae_kernel(
    x_ref, eps_ref,
    e1w, e1b, e2w, e2b, e3w, e3b,             # encoder linears (weights (in,out))
    hw, hb,                                    # fused [mean | log_var] head
    d1w, d1b, d2w, d2b, d3w, d3b, d4w, d4b,    # decoder linears
    recon_ref, packed_ref,
    *, latent_out, packed_width,
):
    f32 = jnp.float32
    bf16 = jnp.bfloat16

    def linear(h, w_ref, b_ref):
        # bf16 MXU operands, f32 accumulation, f32 bias add.
        return (jnp.dot(h.astype(bf16), w_ref[...],
                        preferred_element_type=f32)
                + b_ref[...].astype(f32))

    def relu(h):
        return jnp.maximum(h, 0.0)

    # ---- encoder ----
    # x is streamed in its storage dtype (ideally bf16) and cast to the bf16
    # MXU operand directly inside `linear` (no f32 round trip).
    h = relu(linear(x_ref[...], e1w, e1b))
    h = relu(linear(h, e2w, e2b))
    h = relu(linear(h, e3w, e3b))

    # ---- fused mean / log_var head (single wider matmul) ----
    mv = linear(h, hw, hb)
    mean = mv[:, :latent_out]
    log_var = mv[:, latent_out:2 * latent_out]

    # ---- reparameterization: z = mean + eps * exp(0.5 * log_var) ----
    sigma = jnp.exp(0.5 * log_var)
    z = mean + eps_ref[...].astype(f32) * sigma

    # ---- decoder ----
    d = relu(linear(z, d1w, d1b))
    d = relu(linear(d, d2w, d2b))
    d = relu(linear(d, d3w, d3b))
    recon = jax.nn.sigmoid(linear(d, d4w, d4b))

    # bf16 writeback: halves the largest output DMA stream.
    recon_ref[...] = recon.astype(recon_ref.dtype)

    # Lane-dense packed small outputs: [mean | log_var | z | zero-pad] -> 128.
    pieces = [mean, log_var, z]
    pad_w = packed_width - 3 * latent_out
    if pad_w > 0:
        pieces.append(jnp.zeros((mean.shape[0], pad_w), f32))
    packed_ref[...] = jnp.concatenate(pieces, axis=-1).astype(packed_ref.dtype)


# ----------------------------------------------------------------------------
# Parameter init (mirrors nn.Linear default U(-1/sqrt(in), +1/sqrt(in)))
# Weights are stored already transposed to (in, out) so the kernel does x @ W.
# ----------------------------------------------------------------------------
def init_linear(key, in_dim, out_dim, dtype=jnp.float32):
    kw, kb = jax.random.split(key)
    bound = 1.0 / (in_dim ** 0.5)
    w = jax.random.uniform(kw, (in_dim, out_dim), dtype, minval=-bound, maxval=bound)
    b = jax.random.uniform(kb, (1, out_dim), dtype, minval=-bound, maxval=bound)
    return w, b


def init_vae_params(key, input_dim, latent_dim):
    dims = [(input_dim, latent_dim[0]),
            (latent_dim[0], latent_dim[1]),
            (latent_dim[1], latent_dim[2]),
            (latent_dim[2], latent_dim[3]),   # mean
            (latent_dim[2], latent_dim[3]),   # log_var
            (latent_dim[3], latent_dim[2]),
            (latent_dim[2], latent_dim[1]),
            (latent_dim[1], latent_dim[0]),
            (latent_dim[0], input_dim)]
    keys = jax.random.split(key, len(dims))
    params = []
    for k, (i, o) in zip(keys, dims):
        w, b = init_linear(k, i, o)
        params.extend([w, b])
    return params  # flat list of 18 arrays (9 weights, 9 biases)


def prepare_vae_params(params):
    """Fuse mean/log_var head and pre-cast weights to bf16 (biases stay f32)."""
    (e1w, e1b, e2w, e2b, e3w, e3b,
     mw, mb, vw, vb,
     d1w, d1b, d2w, d2b, d3w, d3b, d4w, d4b) = params
    hw = jnp.concatenate([mw, vw], axis=1)
    hb = jnp.concatenate([mb, vb], axis=1)
    weights = [e1w, e2w, e3w, hw, d1w, d2w, d3w, d4w]
    biases = [e1b, e2b, e3b, hb, d1b, d2b, d3b, d4b]
    out = []
    for w, b in zip(weights, biases):
        out.append(w.astype(jnp.bfloat16))
        out.append(b.astype(jnp.float32))
    return out  # 16 arrays: 8 bf16 weights, 8 f32 biases


# ----------------------------------------------------------------------------
# Wrapper
# ----------------------------------------------------------------------------
@functools.partial(jax.jit,
                   static_argnames=("input_dim", "latent_out", "batch_tile"))
def vae_forward(x, eps, kparams, *, input_dim, latent_out, batch_tile=512):
    org_shape = x.shape
    batch = org_shape[0]
    # Flatten NCHW -> (batch, C*H*W) row-major, like torch .view.  The input
    # is streamed to the kernel in its incoming dtype: produce bf16 upstream
    # to halve the input DMA.  We deliberately do NOT add a standalone
    # f32->bf16 cast pass here (it would add a full extra HBM read+write).
    x_flat = x.reshape(batch, -1)
    eps_p = eps

    # Batch tiling.  Avoid whole-array pad copies in the common cases:
    #  * batch <= batch_tile -> single full-batch block (block dim == array
    #    dim satisfies the layout rule), no padding, grid of 1.
    #  * batch divisible by batch_tile -> exact tiling, no padding.
    if batch <= batch_tile:
        tb = batch
    else:
        tb = batch_tile
    b_pad = _round_up(batch, tb)
    if b_pad != batch:
        # TODO(synk): rare fallback (batch > batch_tile and not divisible);
        # this pad re-copies x in HBM -- prefer batches divisible by batch_tile.
        x_flat = jnp.pad(x_flat, ((0, b_pad - batch), (0, 0)))
        eps_p = jnp.pad(eps_p, ((0, b_pad - batch), (0, 0)))
    grid = (b_pad // tb,)

    packed_width = max(128, _round_up(3 * latent_out, 128))

    batch_map = lambda b: (b, 0)   # blocked on batch
    const_map = lambda b: (0, 0)   # weights/biases: VMEM-resident, DMA'd once

    vmem = pltpu.MemorySpace.VMEM
    in_specs = [
        pl.BlockSpec((tb, input_dim), batch_map, memory_space=vmem),
        pl.BlockSpec((tb, latent_out), batch_map, memory_space=vmem),
    ]
    for p in kparams:
        # Constant index_map keeps params VMEM-resident (fetched once and
        # revisited).  Single-buffering them would free ~1.3 MB more VMEM but
        # is unnecessary headroom at these tile sizes.
        in_specs.append(pl.BlockSpec(p.shape, const_map, memory_space=vmem))

    out_specs = (
        pl.BlockSpec((tb, input_dim), batch_map, memory_space=vmem),
        pl.BlockSpec((tb, packed_width), batch_map, memory_space=vmem),
    )
    out_shapes = (
        jax.ShapeDtypeStruct((b_pad, input_dim), jnp.bfloat16),    # recon (flat, bf16)
        jax.ShapeDtypeStruct((b_pad, packed_width), jnp.float32),  # mean|logvar|z
    )

    # Cost estimate + a VMEM budget computed from the actual tile/param sizes.
    weights = kparams[0::2]
    param_bytes = sum(int(p.size) * p.dtype.itemsize for p in kparams)
    flops = sum(2 * b_pad * w.shape[0] * w.shape[1] for w in weights)
    transcendentals = b_pad * (latent_out + input_dim)  # exp + sigmoid
    x_bytes = int(x_flat.size) * x_flat.dtype.itemsize
    eps_bytes = int(eps_p.size) * eps_p.dtype.itemsize
    out_bytes = b_pad * (2 * input_dim + 4 * packed_width)  # bf16 recon + f32 packed
    cost = pl.CostEstimate(
        flops=int(flops),
        transcendentals=int(transcendentals),
        bytes_accessed=int(param_bytes + x_bytes + eps_bytes + out_bytes))

    tile_io_bytes = (tb * input_dim * x_flat.dtype.itemsize   # x tile
                     + tb * latent_out * eps_p.dtype.itemsize  # eps tile
                     + tb * input_dim * 2                      # recon tile (bf16)
                     + tb * packed_width * 4)                  # packed tile (f32)
    # Cap at 48 MiB (headroom under v7x's 64 MiB physical VMEM); floor at
    # 20 MiB (required on v5e whose scoped default is 16 MiB).
    vmem_limit = int(min(48 << 20,
                         max(20 << 20,
                             2 * (param_bytes + tile_io_bytes) + (8 << 20))))

    kernel = functools.partial(_vae_kernel,
                               latent_out=latent_out,
                               packed_width=packed_width)

    recon_flat, packed = pl.pallas_call(
        kernel,
        grid=grid,
        in_specs=in_specs,
        out_specs=out_specs,
        out_shape=out_shapes,
        compiler_params=pltpu.CompilerParams(
            dimension_semantics=("parallel",),
            vmem_limit_bytes=vmem_limit),
        cost_estimate=cost,
    )(x_flat, eps_p, *kparams)

    recon_x = recon_flat[:batch].reshape(org_shape)
    mean = packed[:batch, 0:latent_out]
    log_var = packed[:batch, latent_out:2 * latent_out]
    z = packed[:batch, 2 * latent_out:3 * latent_out]
    return z, recon_x, mean, log_var


# ----------------------------------------------------------------------------
# Pure-JAX reference mirroring the kernel math (bf16 matmuls, f32 accumulation)
# ----------------------------------------------------------------------------
def vae_forward_ref(x, eps, kparams, latent_out):
    org_shape = x.shape
    h = x.reshape(org_shape[0], -1)
    ws, bs = kparams[0::2], kparams[1::2]

    def lin(a, w, b):
        return jnp.dot(a.astype(jnp.bfloat16), w,
                       preferred_element_type=jnp.float32) + b

    relu = lambda a: jnp.maximum(a, 0.0)
    h = relu(lin(h, ws[0], bs[0]))
    h = relu(lin(h, ws[1], bs[1]))
    h = relu(lin(h, ws[2], bs[2]))
    mv = lin(h, ws[3], bs[3])
    mean = mv[:, :latent_out]
    log_var = mv[:, latent_out:2 * latent_out]
    z = mean + eps * jnp.exp(0.5 * log_var)
    d = relu(lin(z, ws[4], bs[4]))
    d = relu(lin(d, ws[5], bs[5]))
    d = relu(lin(d, ws[6], bs[6]))
    recon = jax.nn.sigmoid(lin(d, ws[7], bs[7])).reshape(org_shape)
    return z, recon, mean, log_var


if __name__ == "__main__":
    # Small, deterministic example: NCHW image flattened to (B, C*H*W).
    B, C, H, W = 2, 4, 16, 16
    input_dim = C * H * W                 # 1024
    latent_dim = (256, 128, 64, 32)

    key = jax.random.PRNGKey(0)
    k_x, k_eps, k_params = jax.random.split(key, 3)

    # Cast x to bf16 at creation to model an upstream bf16 producer: the kernel
    # streams x in whatever dtype it is handed (its first op is a bf16 MXU
    # matmul either way), and bf16 input halves the dominant input DMA stream.
    x = jax.random.normal(k_x, (B, C, H, W), jnp.float32).astype(jnp.bfloat16)
    # TODO(synk): torch.randn_like eps is generated on the fly in the module;
    # here it is an explicit input so the forward stays deterministic.
    eps = jax.random.normal(k_eps, (B, latent_dim[3]), jnp.float32)

    params = init_vae_params(k_params, input_dim, latent_dim)
    kparams = prepare_vae_params(params)   # bf16 weights, fused head, f32 biases

    z, recon_x, mean, log_var = vae_forward(
        x, eps, kparams, input_dim=input_dim, latent_out=latent_dim[3])
    jax.block_until_ready((z, recon_x, mean, log_var))

    # Sanity check against a pure-JAX reference using the same bf16 weights.
    z_r, recon_r, mean_r, logvar_r = vae_forward_ref(x, eps, kparams, latent_dim[3])
    assert z.shape == (B, latent_dim[3])
    assert recon_x.shape == (B, C, H, W)
    assert recon_x.dtype == jnp.bfloat16
    assert mean.shape == (B, latent_dim[3])
    assert log_var.shape == (B, latent_dim[3])
    assert jnp.allclose(mean, mean_r, atol=2e-3, rtol=2e-3)
    assert jnp.allclose(log_var, logvar_r, atol=2e-3, rtol=2e-3)
    assert jnp.allclose(z, z_r, atol=2e-3, rtol=2e-3)
    # recon is stored in bf16 (sigmoid output in [0,1]); ~0.4% relative error.
    assert jnp.allclose(recon_x.astype(jnp.float32), recon_r, atol=1e-2, rtol=2e-2)

    print("KERNEL_OK")
</pallas_src>

<mosaic_0001>
module attributes {stable_mosaic.version = 11 : i64} {
  func.func @_vae_kernel(%arg0: i32, %arg1: memref<2x1024xbf16, #tpu.memory_space<vmem>>, %arg2: memref<2x32xf32, #tpu.memory_space<vmem>>, %arg3: memref<1024x256xbf16, #tpu.memory_space<vmem>>, %arg4: memref<1x256xf32, #tpu.memory_space<vmem>>, %arg5: memref<256x128xbf16, #tpu.memory_space<vmem>>, %arg6: memref<1x128xf32, #tpu.memory_space<vmem>>, %arg7: memref<128x64xbf16, #tpu.memory_space<vmem>>, %arg8: memref<1x64xf32, #tpu.memory_space<vmem>>, %arg9: memref<64x64xbf16, #tpu.memory_space<vmem>>, %arg10: memref<1x64xf32, #tpu.memory_space<vmem>>, %arg11: memref<32x64xbf16, #tpu.memory_space<vmem>>, %arg12: memref<1x64xf32, #tpu.memory_space<vmem>>, %arg13: memref<64x128xbf16, #tpu.memory_space<vmem>>, %arg14: memref<1x128xf32, #tpu.memory_space<vmem>>, %arg15: memref<128x256xbf16, #tpu.memory_space<vmem>>, %arg16: memref<1x256xf32, #tpu.memory_space<vmem>>, %arg17: memref<256x1024xbf16, #tpu.memory_space<vmem>>, %arg18: memref<1x1024xf32, #tpu.memory_space<vmem>>, %arg19: memref<2x1024xbf16, #tpu.memory_space<vmem>>, %arg20: memref<2x128xf32, #tpu.memory_space<vmem>>) attributes {dimension_semantics = [#tpu.dimension_semantics<parallel>], iteration_bounds = array<i64: 1>, scalar_prefetch = 0 : i64, scratch_operands = 0 : i64, tpu.core_type = #tpu.core_type<tc>, window_params = [{transform_indices = @transform_0, window_bounds = array<i64: 2, 1024>}, {transform_indices = @transform_1, window_bounds = array<i64: 2, 32>}, {pipeline_mode = #tpu.pipeline_mode<synchronous>, transform_indices = @transform_2, window_bounds = array<i64: 1024, 256>}, {pipeline_mode = #tpu.pipeline_mode<synchronous>, transform_indices = @transform_3, window_bounds = array<i64: 1, 256>}, {pipeline_mode = #tpu.pipeline_mode<synchronous>, transform_indices = @transform_4, window_bounds = array<i64: 256, 128>}, {pipeline_mode = #tpu.pipeline_mode<synchronous>, transform_indices = @transform_5, window_bounds = array<i64: 1, 128>}, {pipeline_mode = #tpu.pipeline_mode<synchronous>, transform_indices = @transform_6, window_bounds = array<i64: 128, 64>}, {pipeline_mode = #tpu.pipeline_mode<synchronous>, transform_indices = @transform_7, window_bounds = array<i64: 1, 64>}, {pipeline_mode = #tpu.pipeline_mode<synchronous>, transform_indices = @transform_8, window_bounds = array<i64: 64, 64>}, {pipeline_mode = #tpu.pipeline_mode<synchronous>, transform_indices = @transform_9, window_bounds = array<i64: 1, 64>}, {pipeline_mode = #tpu.pipeline_mode<synchronous>, transform_indices = @transform_10, window_bounds = array<i64: 32, 64>}, {pipeline_mode = #tpu.pipeline_mode<synchronous>, transform_indices = @transform_11, window_bounds = array<i64: 1, 64>}, {pipeline_mode = #tpu.pipeline_mode<synchronous>, transform_indices = @transform_12, window_bounds = array<i64: 64, 128>}, {pipeline_mode = #tpu.pipeline_mode<synchronous>, transform_indices = @transform_13, window_bounds = array<i64: 1, 128>}, {pipeline_mode = #tpu.pipeline_mode<synchronous>, transform_indices = @transform_14, window_bounds = array<i64: 128, 256>}, {pipeline_mode = #tpu.pipeline_mode<synchronous>, transform_indices = @transform_15, window_bounds = array<i64: 1, 256>}, {pipeline_mode = #tpu.pipeline_mode<synchronous>, transform_indices = @transform_16, window_bounds = array<i64: 256, 1024>}, {pipeline_mode = #tpu.pipeline_mode<synchronous>, transform_indices = @transform_17, window_bounds = array<i64: 1, 1024>}, {transform_indices = @transform_18, window_bounds = array<i64: 2, 1024>}, {transform_indices = @transform_19, window_bounds = array<i64: 2, 128>}]} {
    %c0 = arith.constant 0 : index
    %c0_0 = arith.constant 0 : index
    %0 = vector.load %arg1[%c0, %c0_0] : memref<2x1024xbf16, #tpu.memory_space<vmem>>, vector<2x1024xbf16>
    %c0_1 = arith.constant 0 : index
    %c0_2 = arith.constant 0 : index
    %1 = vector.load %arg3[%c0_1, %c0_2] : memref<1024x256xbf16, #tpu.memory_space<vmem>>, vector<1024x256xbf16>
    %cst = arith.constant dense<0.000000e+00> : vector<2x256xf32>
    %2 = tpu.matmul %0, %1, %cst {dimension_numbers = #tpu.dot_dimension_numbers<[1], [0], [0], [1], [0, 0, 1, 1], [], []>} : vector<2x1024xbf16>, vector<1024x256xbf16>, vector<2x256xf32> -> vector<2x256xf32>
    %c0_3 = arith.constant 0 : index
    %c0_4 = arith.constant 0 : index
    %3 = vector.load %arg4[%c0_3, %c0_4] : memref<1x256xf32, #tpu.memory_space<vmem>>, vector<1x256xf32>
    %4 = vector.broadcast %3 : vector<1x256xf32> to vector<2x256xf32>
    %5 = arith.addf %2, %4 : vector<2x256xf32>
    %cst_5 = arith.constant 0.000000e+00 : f32
    %6 = vector.broadcast %cst_5 : f32 to vector<2x256xf32>
    %7 = arith.maximumf %5, %6 : vector<2x256xf32>
    %8 = arith.truncf %7 : vector<2x256xf32> to vector<2x256xbf16>
    %c0_6 = arith.constant 0 : index
    %c0_7 = arith.constant 0 : index
    %9 = vector.load %arg5[%c0_6, %c0_7] : memref<256x128xbf16, #tpu.memory_space<vmem>>, vector<256x128xbf16>
    %cst_8 = arith.constant dense<0.000000e+00> : vector<2x128xf32>
    %10 = tpu.matmul %8, %9, %cst_8 {dimension_numbers = #tpu.dot_dimension_numbers<[1], [0], [0], [1], [0, 0, 1, 1], [], []>} : vector<2x256xbf16>, vector<256x128xbf16>, vector<2x128xf32> -> vector<2x128xf32>
    %c0_9 = arith.constant 0 : index
    %c0_10 = arith.constant 0 : index
    %11 = vector.load %arg6[%c0_9, %c0_10] : memref<1x128xf32, #tpu.memory_space<vmem>>, vector<1x128xf32>
    %12 = vector.broadcast %11 : vector<1x128xf32> to vector<2x128xf32>
    %13 = arith.addf %10, %12 : vector<2x128xf32>
    %cst_11 = arith.constant 0.000000e+00 : f32
    %14 = vector.broadcast %cst_11 : f32 to vector<2x128xf32>
    %15 = arith.maximumf %13, %14 : vector<2x128xf32>
    %16 = arith.truncf %15 : vector<2x128xf32> to vector<2x128xbf16>
    %c0_12 = arith.constant 0 : index
    %c0_13 = arith.constant 0 : index
    %17 = vector.load %arg7[%c0_12, %c0_13] : memref<128x64xbf16, #tpu.memory_space<vmem>>, vector<128x64xbf16>
    %cst_14 = arith.constant dense<0.000000e+00> : vector<2x64xf32>
    %18 = tpu.matmul %16, %17, %cst_14 {dimension_numbers = #tpu.dot_dimension_numbers<[1], [0], [0], [1], [0, 0, 1, 1], [], []>} : vector<2x128xbf16>, vector<128x64xbf16>, vector<2x64xf32> -> vector<2x64xf32>
    %c0_15 = arith.constant 0 : index
    %c0_16 = arith.constant 0 : index
    %19 = vector.load %arg8[%c0_15, %c0_16] : memref<1x64xf32, #tpu.memory_space<vmem>>, vector<1x64xf32>
    %20 = vector.broadcast %19 : vector<1x64xf32> to vector<2x64xf32>
    %21 = arith.addf %18, %20 : vector<2x64xf32>
    %cst_17 = arith.constant 0.000000e+00 : f32
    %22 = vector.broadcast %cst_17 : f32 to vector<2x64xf32>
    %23 = arith.maximumf %21, %22 : vector<2x64xf32>
    %24 = arith.truncf %23 : vector<2x64xf32> to vector<2x64xbf16>
    %c0_18 = arith.constant 0 : index
    %c0_19 = arith.constant 0 : index
    %25 = vector.load %arg9[%c0_18, %c0_19] : memref<64x64xbf16, #tpu.memory_space<vmem>>, vector<64x64xbf16>
    %cst_20 = arith.constant dense<0.000000e+00> : vector<2x64xf32>
    %26 = tpu.matmul %24, %25, %cst_20 {dimension_numbers = #tpu.dot_dimension_numbers<[1], [0], [0], [1], [0, 0, 1, 1], [], []>} : vector<2x64xbf16>, vector<64x64xbf16>, vector<2x64xf32> -> vector<2x64xf32>
    %c0_21 = arith.constant 0 : index
    %c0_22 = arith.constant 0 : index
    %27 = vector.load %arg10[%c0_21, %c0_22] : memref<1x64xf32, #tpu.memory_space<vmem>>, vector<1x64xf32>
    %28 = vector.broadcast %27 : vector<1x64xf32> to vector<2x64xf32>
    %29 = arith.addf %26, %28 : vector<2x64xf32>
    %30 = vector.extract_strided_slice %29 {offsets = [0, 0], sizes = [2, 32], strides = [1, 1]} : vector<2x64xf32> to vector<2x32xf32>
    %31 = vector.extract_strided_slice %29 {offsets = [0, 32], sizes = [2, 32], strides = [1, 1]} : vector<2x64xf32> to vector<2x32xf32>
    %cst_23 = arith.constant 5.000000e-01 : f32
    %32 = vector.broadcast %cst_23 : f32 to vector<2x32xf32>
    %33 = arith.mulf %32, %31 : vector<2x32xf32>
    %34 = math.exp %33 : vector<2x32xf32>
    %c0_24 = arith.constant 0 : index
    %c0_25 = arith.constant 0 : index
    %35 = vector.load %arg2[%c0_24, %c0_25] : memref<2x32xf32, #tpu.memory_space<vmem>>, vector<2x32xf32>
    %36 = arith.mulf %35, %34 : vector<2x32xf32>
    %37 = arith.addf %30, %36 : vector<2x32xf32>
    %38 = arith.truncf %37 : vector<2x32xf32> to vector<2x32xbf16>
    %c0_26 = arith.constant 0 : index
    %c0_27 = arith.constant 0 : index
    %39 = vector.load %arg11[%c0_26, %c0_27] : memref<32x64xbf16, #tpu.memory_space<vmem>>, vector<32x64xbf16>
    %cst_28 = arith.constant dense<0.000000e+00> : vector<2x64xf32>
    %40 = tpu.matmul %38, %39, %cst_28 {dimension_numbers = #tpu.dot_dimension_numbers<[1], [0], [0], [1], [0, 0, 1, 1], [], []>} : vector<2x32xbf16>, vector<32x64xbf16>, vector<2x64xf32> -> vector<2x64xf32>
    %c0_29 = arith.constant 0 : index
    %c0_30 = arith.constant 0 : index
    %41 = vector.load %arg12[%c0_29, %c0_30] : memref<1x64xf32, #tpu.memory_space<vmem>>, vector<1x64xf32>
    %42 = vector.broadcast %41 : vector<1x64xf32> to vector<2x64xf32>
    %43 = arith.addf %40, %42 : vector<2x64xf32>
    %cst_31 = arith.constant 0.000000e+00 : f32
    %44 = vector.broadcast %cst_31 : f32 to vector<2x64xf32>
    %45 = arith.maximumf %43, %44 : vector<2x64xf32>
    %46 = arith.truncf %45 : vector<2x64xf32> to vector<2x64xbf16>
    %c0_32 = arith.constant 0 : index
    %c0_33 = arith.constant 0 : index
    %47 = vector.load %arg13[%c0_32, %c0_33] : memref<64x128xbf16, #tpu.memory_space<vmem>>, vector<64x128xbf16>
    %cst_34 = arith.constant dense<0.000000e+00> : vector<2x128xf32>
    %48 = tpu.matmul %46, %47, %cst_34 {dimension_numbers = #tpu.dot_dimension_numbers<[1], [0], [0], [1], [0, 0, 1, 1], [], []>} : vector<2x64xbf16>, vector<64x128xbf16>, vector<2x128xf32> -> vector<2x128xf32>
    %c0_35 = arith.constant 0 : index
    %c0_36 = arith.constant 0 : index
    %49 = vector.load %arg14[%c0_35, %c0_36] : memref<1x128xf32, #tpu.memory_space<vmem>>, vector<1x128xf32>
    %50 = vector.broadcast %49 : vector<1x128xf32> to vector<2x128xf32>
    %51 = arith.addf %48, %50 : vector<2x128xf32>
    %cst_37 = arith.constant 0.000000e+00 : f32
    %52 = vector.broadcast %cst_37 : f32 to vector<2x128xf32>
    %53 = arith.maximumf %51, %52 : vector<2x128xf32>
    %54 = arith.truncf %53 : vector<2x128xf32> to vector<2x128xbf16>
    %c0_38 = arith.constant 0 : index
    %c0_39 = arith.constant 0 : index
    %55 = vector.load %arg15[%c0_38, %c0_39] : memref<128x256xbf16, #tpu.memory_space<vmem>>, vector<128x256xbf16>
    %cst_40 = arith.constant dense<0.000000e+00> : vector<2x256xf32>
    %56 = tpu.matmul %54, %55, %cst_40 {dimension_numbers = #tpu.dot_dimension_numbers<[1], [0], [0], [1], [0, 0, 1, 1], [], []>} : vector<2x128xbf16>, vector<128x256xbf16>, vector<2x256xf32> -> vector<2x256xf32>
    %c0_41 = arith.constant 0 : index
    %c0_42 = arith.constant 0 : index
    %57 = vector.load %arg16[%c0_41, %c0_42] : memref<1x256xf32, #tpu.memory_space<vmem>>, vector<1x256xf32>
    %58 = vector.broadcast %57 : vector<1x256xf32> to vector<2x256xf32>
    %59 = arith.addf %56, %58 : vector<2x256xf32>
    %cst_43 = arith.constant 0.000000e+00 : f32
    %60 = vector.broadcast %cst_43 : f32 to vector<2x256xf32>
    %61 = arith.maximumf %59, %60 : vector<2x256xf32>
    %62 = arith.truncf %61 : vector<2x256xf32> to vector<2x256xbf16>
    %c0_44 = arith.constant 0 : index
    %c0_45 = arith.constant 0 : index
    %63 = vector.load %arg17[%c0_44, %c0_45] : memref<256x1024xbf16, #tpu.memory_space<vmem>>, vector<256x1024xbf16>
    %cst_46 = arith.constant dense<0.000000e+00> : vector<2x1024xf32>
    %64 = tpu.matmul %62, %63, %cst_46 {dimension_numbers = #tpu.dot_dimension_numbers<[1], [0], [0], [1], [0, 0, 1, 1], [], []>} : vector<2x256xbf16>, vector<256x1024xbf16>, vector<2x1024xf32> -> vector<2x1024xf32>
    %c0_47 = arith.constant 0 : index
    %c0_48 = arith.constant 0 : index
    %65 = vector.load %arg18[%c0_47, %c0_48] : memref<1x1024xf32, #tpu.memory_space<vmem>>, vector<1x1024xf32>
    %66 = vector.broadcast %65 : vector<1x1024xf32> to vector<2x1024xf32>
    %67 = arith.addf %64, %66 : vector<2x1024xf32>
    %68 = arith.negf %67 : vector<2x1024xf32>
    %69 = math.exp %68 : vector<2x1024xf32>
    %cst_49 = arith.constant 1.000000e+00 : f32
    %70 = vector.broadcast %cst_49 : f32 to vector<2x1024xf32>
    %71 = arith.addf %70, %69 : vector<2x1024xf32>
    %72 = arith.divf %70, %71 : vector<2x1024xf32>
    %73 = arith.truncf %72 : vector<2x1024xf32> to vector<2x1024xbf16>
    %c0_50 = arith.constant 0 : index
    %c0_51 = arith.constant 0 : index
    %74 = vector.load %arg19[%c0_50, %c0_51] : memref<2x1024xbf16, #tpu.memory_space<vmem>>, vector<2x1024xbf16>
    tpu.vector_store %arg19[%c0_50, %c0_51], %73 {strides = array<i32>} : memref<2x1024xbf16, #tpu.memory_space<vmem>>, vector<2x1024xbf16>,
    %cst_52 = arith.constant 0.000000e+00 : f32
    %75 = vector.broadcast %cst_52 : f32 to vector<2x32xf32>
    %76 = tpu.concatenate %30, %31, %37, %75 in 1 : vector<2x32xf32>, vector<2x32xf32>, vector<2x32xf32>, vector<2x32xf32> -> vector<2x128xf32>
    %c0_53 = arith.constant 0 : index
    %c0_54 = arith.constant 0 : index
    %77 = vector.load %arg20[%c0_53, %c0_54] : memref<2x128xf32, #tpu.memory_space<vmem>>, vector<2x128xf32>
    tpu.vector_store %arg20[%c0_53, %c0_54], %76 {strides = array<i32>} : memref<2x128xf32, #tpu.memory_space<vmem>>, vector<2x128xf32>,
    return
  }
  func.func @transform_0(%arg0: i32) -> (i32, i32) {
    %c0_i32 = arith.constant 0 : i32
    %c0_i32_0 = arith.constant 0 : i32
    return %arg0, %c0_i32 : i32, i32
  }
  func.func @transform_1(%arg0: i32) -> (i32, i32) {
    %c0_i32 = arith.constant 0 : i32
    %c0_i32_0 = arith.constant 0 : i32
    return %arg0, %c0_i32 : i32, i32
  }
  func.func @transform_2(%arg0: i32) -> (i32, i32) {
    %c0_i32 = arith.constant 0 : i32
    %c0_i32_0 = arith.constant 0 : i32
    %c0_i32_1 = arith.constant 0 : i32
    return %c0_i32, %c0_i32_0 : i32, i32
  }
  func.func @transform_3(%arg0: i32) -> (i32, i32) {
    %c0_i32 = arith.constant 0 : i32
    %c0_i32_0 = arith.constant 0 : i32
    %c0_i32_1 = arith.constant 0 : i32
    return %c0_i32, %c0_i32_0 : i32, i32
  }
  func.func @transform_4(%arg0: i32) -> (i32, i32) {
    %c0_i32 = arith.constant 0 : i32
    %c0_i32_0 = arith.constant 0 : i32
    %c0_i32_1 = arith.constant 0 : i32
    return %c0_i32, %c0_i32_0 : i32, i32
  }
  func.func @transform_5(%arg0: i32) -> (i32, i32) {
    %c0_i32 = arith.constant 0 : i32
    %c0_i32_0 = arith.constant 0 : i32
    %c0_i32_1 = arith.constant 0 : i32
    return %c0_i32, %c0_i32_0 : i32, i32
  }
  func.func @transform_6(%arg0: i32) -> (i32, i32) {
    %c0_i32 = arith.constant 0 : i32
    %c0_i32_0 = arith.constant 0 : i32
    %c0_i32_1 = arith.constant 0 : i32
    return %c0_i32, %c0_i32_0 : i32, i32
  }
  func.func @transform_7(%arg0: i32) -> (i32, i32) {
    %c0_i32 = arith.constant 0 : i32
    %c0_i32_0 = arith.constant 0 : i32
    %c0_i32_1 = arith.constant 0 : i32
    return %c0_i32, %c0_i32_0 : i32, i32
  }
  func.func @transform_8(%arg0: i32) -> (i32, i32) {
    %c0_i32 = arith.constant 0 : i32
    %c0_i32_0 = arith.constant 0 : i32
    %c0_i32_1 = arith.constant 0 : i32
    return %c0_i32, %c0_i32_0 : i32, i32
  }
  func.func @transform_9(%arg0: i32) -> (i32, i32) {
    %c0_i32 = arith.constant 0 : i32
    %c0_i32_0 = arith.constant 0 : i32
    %c0_i32_1 = arith.constant 0 : i32
    return %c0_i32, %c0_i32_0 : i32, i32
  }
  func.func @transform_10(%arg0: i32) -> (i32, i32) {
    %c0_i32 = arith.constant 0 : i32
    %c0_i32_0 = arith.constant 0 : i32
    %c0_i32_1 = arith.constant 0 : i32
    return %c0_i32, %c0_i32_0 : i32, i32
  }
  func.func @transform_11(%arg0: i32) -> (i32, i32) {
    %c0_i32 = arith.constant 0 : i32
    %c0_i32_0 = arith.constant 0 : i32
    %c0_i32_1 = arith.constant 0 : i32
    return %c0_i32, %c0_i32_0 : i32, i32
  }
  func.func @transform_12(%arg0: i32) -> (i32, i32) {
    %c0_i32 = arith.constant 0 : i32
    %c0_i32_0 = arith.constant 0 : i32
    %c0_i32_1 = arith.constant 0 : i32
    return %c0_i32, %c0_i32_0 : i32, i32
  }
  func.func @transform_13(%arg0: i32) -> (i32, i32) {
    %c0_i32 = arith.constant 0 : i32
    %c0_i32_0 = arith.constant 0 : i32
    %c0_i32_1 = arith.constant 0 : i32
    return %c0_i32, %c0_i32_0 : i32, i32
  }
  func.func @transform_14(%arg0: i32) -> (i32, i32) {
    %c0_i32 = arith.constant 0 : i32
    %c0_i32_0 = arith.constant 0 : i32
    %c0_i32_1 = arith.constant 0 : i32
    return %c0_i32, %c0_i32_0 : i32, i32
  }
  func.func @transform_15(%arg0: i32) -> (i32, i32) {
    %c0_i32 = arith.constant 0 : i32
    %c0_i32_0 = arith.constant 0 : i32
    %c0_i32_1 = arith.constant 0 : i32
    return %c0_i32, %c0_i32_0 : i32, i32
  }
  func.func @transform_16(%arg0: i32) -> (i32, i32) {
    %c0_i32 = arith.constant 0 : i32
    %c0_i32_0 = arith.constant 0 : i32
    %c0_i32_1 = arith.constant 0 : i32
    return %c0_i32, %c0_i32_0 : i32, i32
  }
  func.func @transform_17(%arg0: i32) -> (i32, i32) {
    %c0_i32 = arith.constant 0 : i32
    %c0_i32_0 = arith.constant 0 : i32
    %c0_i32_1 = arith.constant 0 : i32
    return %c0_i32, %c0_i32_0 : i32, i32
  }
  func.func @transform_18(%arg0: i32) -> (i32, i32) {
    %c0_i32 = arith.constant 0 : i32
    %c0_i32_0 = arith.constant 0 : i32
    return %arg0, %c0_i32 : i32, i32
  }
  func.func @transform_19(%arg0: i32) -> (i32, i32) {
    %c0_i32 = arith.constant 0 : i32
    %c0_i32_0 = arith.constant 0 : i32
    return %arg0, %c0_i32 : i32, i32
  }
}

</mosaic_0001>

<bundles_post_ra>
// kernel: vae_forward.1
= control target key start
LH: loop header
LB: loop body
LE: loop exit
PB: predicated region body
PF: predicated region fallthrough
CT: control target
= control target key end

     0   :  { %s4369_s0 = inlined_call_operand.vmem [shape: bf16[2,1024], index: 0, kind: input, shape index: {}]   ;;  %s4370_s1 = inlined_call_operand.vmem [shape: f32[2,32], index: 1, kind: input, shape index: {}]   ;;  %s4371_s2 = inlined_call_operand.hbm [shape: bf16[1024,256], index: 2, kind: input, shape index: {}]   ;;  %s4372_s3 = inlined_call_operand.hbm [shape: f32[1,256], index: 3, kind: input, shape index: {}]   ;;  %s4373_s4 = inlined_call_operand.vmem [shape: bf16[256,128], index: 4, kind: input, shape index: {}]   ;;  %s4374_s5 = inlined_call_operand.hbm [shape: f32[1,128], index: 5, kind: input, shape index: {}]   ;;  %s4375_s6 = inlined_call_operand.vmem [shape: bf16[128,64], index: 6, kind: input, shape index: {}]   ;;  %s4376_s7 = inlined_call_operand.hbm [shape: f32[1,64], index: 7, kind: input, shape index: {}]   ;;  %s4377_s8 = inlined_call_operand.vmem [shape: bf16[64,64], index: 8, kind: input, shape index: {}]   ;;  %s4378_s9 = inlined_call_operand.hbm [shape: f32[1,64], index: 9, kind: input, shape index: {}]   ;;  %s4379_s10 = inlined_call_operand.hbm [shape: bf16[32,64], index: 10, kind: input, shape index: {}]   ;;  %s4380_s11 = inlined_call_operand.vmem [shape: f32[1,64], index: 11, kind: input, shape index: {}]   ;;  %s4381_s12 = inlined_call_operand.vmem [shape: bf16[64,128], index: 12, kind: input, shape index: {}]   ;;  %s4382_s13 = inlined_call_operand.vmem [shape: f32[1,128], index: 13, kind: input, shape index: {}]   ;;  %s4383_s14 = inlined_call_operand.hbm [shape: bf16[128,256], index: 14, kind: input, shape index: {}]   ;;  %s4384_s15 = inlined_call_operand.vmem [shape: f32[1,256], index: 15, kind: input, shape index: {}]   ;;  %s4385_s16 = inlined_call_operand.hbm [shape: bf16[256,1024], index: 16, kind: input, shape index: {}]   ;;  %s4386_s17 = inlined_call_operand.vmem [shape: f32[1,1024], index: 17, kind: input, shape index: {}]   ;;  %s4387_s18 = inlined_call_operand.vmem [shape: bf16[2,1024], index: 18, kind: output, shape index: {0}]   ;;  %s4388_s19 = inlined_call_operand.vmem [shape: f32[2,128], index: 19, kind: output, shape index: {1}]  }
   0x1   :  { %4392 = sst [smem:[#allocation20_spill]] %s4369_s0 }
   0x2   :  { %4393 = sst [smem:[#allocation21_spill]] %s4370_s1 }
   0x3   :  { %4394 = sst [smem:[#allocation22_spill]] %s4371_s2 }
   0x4   :  { %4395 = sst [smem:[#allocation23_spill]] %s4372_s3 }
   0x5   :  { %25 = vsyncpa [#allocation3], 0 }
   0x6   :  { %26 = vsyncpa [#allocation5], 0 }
   0x7   :  { %27 = vsyncpa [#allocation8], 0 }
   0x8   :  { %28 = vsyncpa [#allocation11], 0 }
   0x9   :  { %29 = vsyncpa [#allocation14], 0  ;;  %s3896_s0 = smov [#allocation4]   ;;  %s3897_s20 = smov [#allocation7]  }
   0xa   :  { %s52_s30 = sshll.u32 %s3896_s0, 4  ;;  %s76_s21 = sshll.u32 %s3897_s20, 4  ;;  %s53_s30 = int_to_ptr.vmem [resolvable:$true] %s52_s30  ;;  %s77_s21 = int_to_ptr.vmem [resolvable:$true] %s76_s21 }
   0xb   :  { %s4396_s2 = sld [smem:[#allocation23_spill]] }
  0x11   :  { %s3710_s23 = scalar_lea.hbm %s4396_s2, 32 }
  0x12   :  { %p3711_p0 = scmp.ne.s32.totalorder %s4396_s2, %s3710_s23  ;;  %p3714_p1 = scmp.lt.u32.totalorder %s3710_s23, %s4396_s2 }
  0x14   :  { %p3716_p2 = pnand %p3714_p1, %p3711_p0 }
  0x16   :  { %3719 = shalt.err (!%p3716_p2)
}
  0x17   :  { %s3720_s27 = scalar_lea.vmem %s53_s30, 32  ;;  %p3725_p4 = scmp.lt.s32.totalorder %s53_s30, %s53_s30 }
  0x18   :  { %p3721_p3 = scmp.ne.s32.totalorder %s53_s30, %s3720_s27  ;;  %p3726_p5 = scmp.lt.s32.totalorder %s3720_s27, %s3720_s27 }
  0x1a   :  { %p3727_p6 = por %p3726_p5, %p3725_p4 }
  0x1c   :  { %p3728_p7 = pnand %p3727_p6, %p3721_p3 }
  0x1e   :  { %3731 = shalt.err (!%p3728_p7)
}
  0x1f   :  { %55 = dma.hbm_to_vmem [thread:$0]  %s4396_s2, 32, %s53_s30, [#allocation5]  }
  0x20   :  { %s3732_s1 = scalar_lea.hbm %s4376_s7, 16 }
  0x21   :  { %p3733_p8 = scmp.ne.s32.totalorder %s4376_s7, %s3732_s1  ;;  %p3736_p9 = scmp.lt.u32.totalorder %s3732_s1, %s4376_s7 }
  0x23   :  { %p3738_p10 = pnand %p3736_p9, %p3733_p8 }
  0x25   :  { %3741 = shalt.err (!%p3738_p10)
}
  0x26   :  { %s3742_s3 = scalar_lea.vmem %s77_s21, 16  ;;  %s3746_s26 = scalar_lea.vmem %s77_s21, 32 }
  0x27   :  { %p3743_p11 = scmp.ne.s32.totalorder %s77_s21, %s3742_s3  ;;  %p3747_p12 = scmp.lt.s32.totalorder %s77_s21, %s77_s21 }
  0x28   :  { %p3748_p13 = scmp.lt.s32.totalorder %s3746_s26, %s3742_s3 }
  0x2a   :  { %p3749_p0 = por %p3748_p13, %p3747_p12 }
  0x2c   :  { %p3750_p1 = pnand %p3749_p0, %p3743_p11 }
  0x2e   :  { %3753 = shalt.err (!%p3750_p1)
}
  0x2f   :  { %79 = dma.hbm_to_vmem [thread:$0]  %s4376_s7, 16, %s77_s21, [#allocation8]  }
  0x30   :  { %s3898_s27 = smov [#allocation10]   ;;  %s3754_s20 = scalar_lea.hbm %s4379_s10, 256 }
  0x31   :  { %s97_s28 = sshll.u32 %s3898_s27, 4  ;;  %p3755_p2 = scmp.ne.s32.totalorder %s4379_s10, %s3754_s20  ;;  %s98_s28 = int_to_ptr.vmem [resolvable:$true] %s97_s28 }
  0x32   :  { %p3758_p3 = scmp.lt.u32.totalorder %s3754_s20, %s4379_s10 }
  0x34   :  { %p3760_p4 = pnand %p3758_p3, %p3755_p2 }
  0x36   :  { %3763 = shalt.err (!%p3760_p4)
}
  0x37   :  { %s3764_s25 = scalar_lea.vmem %s98_s28, 256  ;;  %p3769_p6 = scmp.lt.s32.totalorder %s98_s28, %s98_s28 }
  0x38   :  { %p3765_p5 = scmp.ne.s32.totalorder %s98_s28, %s3764_s25  ;;  %p3770_p7 = scmp.lt.s32.totalorder %s3764_s25, %s3764_s25 }
  0x3a   :  { %p3771_p8 = por %p3770_p7, %p3769_p6 }
  0x3c   :  { %p3772_p9 = pnand %p3771_p8, %p3765_p5 }
  0x3e   :  { %3775 = shalt.err (!%p3772_p9)
}
  0x3f   :  { %s4391_s7 = smov 64   ;;  %s3900_s21 = smov 4  }
  0x40   :  { %103 = dma.hbm_to_vmem [thread:$0]  %s4379_s10, 256, %s98_s28, [#allocation11], %s4391_s7, %s4391_s7, %s3900_s21  }
  0x41   :  { %s3901_s30 = smov [#allocation2]   ;;  %s4397_s0 = sld [smem:[#allocation22_spill]] }
  0x42   :  { %s39_s2 = sshll.u32 %s3901_s30, 4  ;;  %s40_s2 = int_to_ptr.vmem [resolvable:$true] %s39_s2 }
  0x47   :  { %s3776_s20 = scalar_lea.hbm %s4397_s0, 16384 }
  0x48   :  { %p3777_p10 = scmp.ne.s32.totalorder %s4397_s0, %s3776_s20  ;;  %p3780_p11 = scmp.lt.u32.totalorder %s3776_s20, %s4397_s0 }
  0x4a   :  { %p3782_p12 = pnand %p3780_p11, %p3777_p10 }
  0x4c   :  { %3785 = shalt.err (!%p3782_p12)
}
  0x4d   :  { %s3786_s25 = scalar_lea.vmem %s40_s2, 16384  ;;  %p3791_p0 = scmp.lt.s32.totalorder %s40_s2, %s40_s2 }
  0x4e   :  { %p3787_p13 = scmp.ne.s32.totalorder %s40_s2, %s3786_s25  ;;  %p3792_p1 = scmp.lt.s32.totalorder %s3786_s25, %s3786_s25 }
  0x50   :  { %p3793_p2 = por %p3792_p1, %p3791_p0 }
  0x52   :  { %p3794_p3 = pnand %p3793_p2, %p3787_p13 }
  0x54   :  { %3797 = shalt.err (!%p3794_p3)
}
  0x55   :  { %s3902_s10 = smov 128   ;;  %s3903_s28 = smov 8  }
  0x56   :  { %45 = dma.hbm_to_vmem [thread:$0]  %s4397_s0, 16384, %s40_s2, [#allocation3], %s3902_s10, %s3902_s10, %s3903_s28  }
  0x57   :  { %s3904_s26 = smov [#allocation6]   ;;  %s3905_s27 = smov [#allocation9]  }
  0x58   :  { %s64_s30 = sshll.u32 %s3904_s26, 4  ;;  %s88_s29 = sshll.u32 %s3905_s27, 4  ;;  %s65_s30 = int_to_ptr.vmem [resolvable:$true] %s64_s30  ;;  %s89_s29 = int_to_ptr.vmem [resolvable:$true] %s88_s29 }
  0x59   :  { %s3798_s22 = scalar_lea.hbm %s4374_s5, 16 }
  0x5a   :  { %p3799_p4 = scmp.ne.s32.totalorder %s4374_s5, %s3798_s22  ;;  %p3802_p5 = scmp.lt.u32.totalorder %s3798_s22, %s4374_s5 }
  0x5c   :  { %p3804_p6 = pnand %p3802_p5, %p3799_p4 }
  0x5e   :  { %3807 = shalt.err (!%p3804_p6)
}
  0x5f   :  { %s3808_s2 = scalar_lea.vmem %s65_s30, 16  ;;  %s3812_s0 = scalar_lea.vmem %s65_s30, 32 }
  0x60   :  { %p3809_p7 = scmp.ne.s32.totalorder %s65_s30, %s3808_s2  ;;  %p3813_p8 = scmp.lt.s32.totalorder %s65_s30, %s65_s30 }
  0x61   :  { %p3814_p9 = scmp.lt.s32.totalorder %s3812_s0, %s3808_s2 }
  0x63   :  { %p3815_p10 = por %p3814_p9, %p3813_p8 }
  0x65   :  { %p3816_p11 = pnand %p3815_p10, %p3809_p7 }
  0x67   :  { %3819 = shalt.err (!%p3816_p11)
}
  0x68   :  { %67 = dma.hbm_to_vmem [thread:$0]  %s4374_s5, 16, %s65_s30, [#allocation5]  }
  0x69   :  { %s3820_s20 = scalar_lea.hbm %s4378_s9, 16 }
  0x6a   :  { %p3821_p12 = scmp.ne.s32.totalorder %s4378_s9, %s3820_s20  ;;  %p3824_p13 = scmp.lt.u32.totalorder %s3820_s20, %s4378_s9 }
  0x6c   :  { %p3826_p0 = pnand %p3824_p13, %p3821_p12 }
  0x6e   :  { %3829 = shalt.err (!%p3826_p0)
}
  0x6f   :  { %s3830_s23 = scalar_lea.vmem %s89_s29, 16  ;;  %s3834_s25 = scalar_lea.vmem %s89_s29, 32 }
  0x70   :  { %p3831_p1 = scmp.ne.s32.totalorder %s89_s29, %s3830_s23  ;;  %p3835_p2 = scmp.lt.s32.totalorder %s89_s29, %s89_s29 }
  0x71   :  { %p3836_p3 = scmp.lt.s32.totalorder %s3834_s25, %s3830_s23 }
  0x73   :  { %p3837_p4 = por %p3836_p3, %p3835_p2 }
  0x75   :  { %p3838_p5 = pnand %p3837_p4, %p3831_p1 }
  0x77   :  { %3841 = shalt.err (!%p3838_p5)
}
  0x78   :  { %91 = dma.hbm_to_vmem [thread:$0]  %s4378_s9, 16, %s89_s29, [#allocation8]  }
  0x79   :  { %s3906_s2 = smov [#allocation12]   ;;  %s3907_s21 = smov [#allocation13]  }
  0x7a   :  { %s115_s0 = sshll.u32 %s3906_s2, 4  ;;  %s129_s3 = sshll.u32 %s3907_s21, 4  ;;  %s116_s0 = int_to_ptr.vmem [resolvable:$true] %s115_s0  ;;  %s4092_s3 = int_to_ptr.vmem [resolvable:$true] %s129_s3 }
  0x7b   :  { %s3842_s20 = scalar_lea.hbm %s4383_s14, 2048 }
  0x7c   :  { %p3843_p6 = scmp.ne.s32.totalorder %s4383_s14, %s3842_s20  ;;  %p3846_p7 = scmp.lt.u32.totalorder %s3842_s20, %s4383_s14 }
  0x7e   :  { %p3848_p8 = pnand %p3846_p7, %p3843_p6 }
  0x80   :  { %3851 = shalt.err (!%p3848_p8)
}
  0x81   :  { %s3852_s9 = scalar_lea.vmem %s116_s0, 2048  ;;  %p3857_p10 = scmp.lt.s32.totalorder %s116_s0, %s116_s0 }
  0x82   :  { %p3853_p9 = scmp.ne.s32.totalorder %s116_s0, %s3852_s9  ;;  %p3858_p11 = scmp.lt.s32.totalorder %s3852_s9, %s3852_s9 }
  0x84   :  { %p3859_p12 = por %p3858_p11, %p3857_p10 }
  0x86   :  { %p3860_p13 = pnand %p3859_p12, %p3853_p9 }
  0x88   :  { %3863 = shalt.err (!%p3860_p13)
}
  0x89   :  { %121 = dma.hbm_to_vmem [thread:$0]  %s4383_s14, 2048, %s116_s0, [#allocation11], %s3902_s10, %s3902_s10, %s3903_s28  }
  0x8a   :  { %s3864_s30 = scalar_lea.hbm %s4385_s16, 16384 }
  0x8b   :  { %p3865_p0 = scmp.ne.s32.totalorder %s4385_s16, %s3864_s30  ;;  %p3868_p1 = scmp.lt.u32.totalorder %s3864_s30, %s4385_s16 }
  0x8d   :  { %p3870_p2 = pnand %p3868_p1, %p3865_p0 }
  0x8f   :  { %3873 = shalt.err (!%p3870_p2)
}
  0x90   :  { %s3874_s20 = scalar_lea.vmem %s4092_s3, 16384  ;;  %p3879_p4 = scmp.lt.s32.totalorder %s4092_s3, %s4092_s3 }
  0x91   :  { %p3875_p3 = scmp.ne.s32.totalorder %s4092_s3, %s3874_s20  ;;  %p3880_p5 = scmp.lt.s32.totalorder %s3874_s20, %s3874_s20 }
  0x93   :  { %p3881_p6 = por %p3880_p5, %p3879_p4 }
  0x95   :  { %p3882_p7 = pnand %p3881_p6, %p3875_p3 }
  0x97   :  { %3885 = shalt.err (!%p3882_p7)
}
  0x98   :  { %s3908_s14 = smov 512   ;;  %s3909_s10 = smov 32  }
  0x99   :  { %135 = dma.hbm_to_vmem [thread:$0]  %s4385_s16, 16384, %s4092_s3, [#allocation14], %s3908_s14, %s3908_s14, %s3909_s10  }
  0x9a   :  { %3886 = dma.done.wait [#allocation3], 16384  }
  0x9b   :  { %3887 = vsyncadd [#allocation3], 4294950912 }
  0x9c   :  { %3888 = dma.done.wait [#allocation5], 48  }
  0x9d   :  { %3889 = vsyncadd [#allocation5], 4294967248 }
  0x9e   :  { %3890 = dma.done.wait [#allocation8], 32  }
  0x9f   :  { %3891 = vsyncadd [#allocation8], 4294967264 }
  0xa0   :  { %3892 = dma.done.wait [#allocation11], 2304  }
  0xa1   :  { %3893 = vsyncadd [#allocation11], 4294964992 }
  0xa2   :  { %3894 = dma.done.wait [#allocation14], 16384  }
  0xa3   :  { %3895 = vsyncadd [#allocation14], 4294950912  ;;  %v3425_v0 = vld [vmem:[#allocation2 + $0x4] ss:$8 sps:$4 sm:$0xff]   ;;  %v3427_v1 = vld [vmem:[#allocation2] ss:$8 sps:$4 sm:$0xff]   ;;  %v294_v7 = vlaneseq }
  0xa4   :  { %1002 = vmatprep.subr.bf16.mxu0 %v3425_v0  ;;  %v3428_v2 = vld [vmem:[#allocation2 + $0x14] ss:$8 sps:$4 sm:$0xff]   ;;  %v3430_v3 = vld [vmem:[#allocation2 + $0x10] ss:$8 sps:$4 sm:$0xff]   ;;  %v3431_v4 = vld [vmem:[#allocation2 + $0x24] ss:$8 sps:$4 sm:$0xff]  }
  0xa5   :  { %1003 = vmatpush1.bf16.msra.mxu0 %v3427_v1  ;;  %v3433_v5 = vld [vmem:[#allocation2 + $0x20] ss:$8 sps:$4 sm:$0xff]   ;;  %v3434_v6 = vld [vmem:[#allocation2 + $0x34] ss:$8 sps:$4 sm:$0xff]   ;;  %v3910_v8 = vmov 1966171168  }
  0xa6   :  { %1004 = vmatprep.subr.bf16.mxu0 %v3428_v2  ;;  %v307_v9 = vunpack.c.l.s4 %v3910_v8  ;;  %v3436_v10 = vld [vmem:[#allocation2 + $0x30] ss:$8 sps:$4 sm:$0xff]   ;;  %v3437_v11 = vld [vmem:[#allocation2 + $0x44] ss:$8 sps:$4 sm:$0xff]   ;;  %v4126_v12 = vshrl.u32 %v294_v7, 7  ;;  %s4398_s7 = sld [smem:[#allocation20_spill]] }
  0xa7   :  { %v3439_v14 = vld [vmem:[#allocation2 + $0x40] ss:$8 sps:$4 sm:$0xff]   ;;  %v3440_v15 = vld [vmem:[#allocation2 + $0x54] ss:$8 sps:$4 sm:$0xff]   ;;  %v3442_v17 = vld [vmem:[#allocation2 + $0x50] ss:$8 sps:$4 sm:$0xff]  }
  0xa8   :  { %v308_v13 = vunpack.c.0.s8 %v307_v9  ;;  %v3443_v18 = vld [vmem:[#allocation2 + $0x64] ss:$8 sps:$4 sm:$0xff]   ;;  %v3445_v21 = vld [vmem:[#allocation2 + $0x60] ss:$8 sps:$4 sm:$0xff]   ;;  %v3446_v22 = vld [vmem:[#allocation2 + $0x74] ss:$8 sps:$4 sm:$0xff]  }
  0xa9   :  { %1005 = vmatpush1.bf16.msra.mxu0 %v3430_v3  ;;  %v3448_v25 = vld [vmem:[#allocation2 + $0x70] ss:$8 sps:$4 sm:$0xff]   ;;  %v3449_v26 = vld [vmem:[#allocation2 + $0x84] ss:$8 sps:$4 sm:$0xff]   ;;  %v3451_v27 = vld [vmem:[#allocation2 + $0x80] ss:$8 sps:$4 sm:$0xff]  }
  0xaa   :  { %1006 = vmatprep.subr.bf16.mxu0 %v3431_v4  ;;  %v4129_v16 = vsub.s32 %v308_v13, %v4126_v12  ;;  %v3452_v28 = vld [vmem:[#allocation2 + $0x94] ss:$8 sps:$4 sm:$0xff]   ;;  %v3454_v29 = vld [vmem:[#allocation2 + $0x90] ss:$8 sps:$4 sm:$0xff]   ;;  %v3455_v30 = vld [vmem:[#allocation2 + $0xa4] ss:$8 sps:$4 sm:$0xff]  }
  0xab   :  { %v3457_v31 = vld [vmem:[#allocation2 + $0xa0] ss:$8 sps:$4 sm:$0xff]   ;;  %v3458_v32 = vld [vmem:[#allocation2 + $0xb4] ss:$8 sps:$4 sm:$0xff]   ;;  %v3460_v33 = vld [vmem:[#allocation2 + $0xb0] ss:$8 sps:$4 sm:$0xff]  }
  0xac   :  { %v4134_v19 = vld [vmem:[%s4398_s7] sm:$0xff]  ;;  %v3464_v36 = vld [vmem:[#allocation2 + $0xd4] ss:$8 sps:$4 sm:$0xff]   ;;  %v3466_v37 = vld [vmem:[#allocation2 + $0xd0] ss:$8 sps:$4 sm:$0xff]   ;;  %vm3912_vm0 = vmmov 0  }
  0xad   :  { %1007 = vmatpush1.bf16.msra.mxu0 %v3433_v5  ;;  %v312_v20 = vrot.slane %v4134_v19, %v4129_v16  ;;  %v3461_v34 = vld [vmem:[#allocation2 + $0xc4] ss:$8 sps:$4 sm:$0xff]   ;;  %v3463_v35 = vld [vmem:[#allocation2 + $0xc0] ss:$8 sps:$4 sm:$0xff]   ;;  %v3470_v40 = vld [vmem:[#allocation2 + $0xf4] ss:$8 sps:$4 sm:$0xff]   ;;  %v305_v7 = vcombine.high %v4134_v19, %v4134_v19 }
  0xae   :  { %1008 = vmatprep.subr.bf16.mxu0 %v3434_v6  ;;  %v3467_v38 = vld [vmem:[#allocation2 + $0xe4] ss:$8 sps:$4 sm:$0xff]   ;;  %v3469_v39 = vld [vmem:[#allocation2 + $0xe0] ss:$8 sps:$4 sm:$0xff]   ;;  %v3472_v41 = vld [vmem:[#allocation2 + $0xf0] ss:$8 sps:$4 sm:$0xff]  }
  0xaf   :  { %v320_v23 = vcombine.high %v312_v20, %v312_v20  ;;  %v3476_v42 = vld [vmem:[#allocation2 + $0x104] ss:$8 sps:$4 sm:$0xff]   ;;  %v4140_v43 = vrot.slane %v312_v20, %v4129_v16  ;;  %v3474_v45 = vld [vmem:[#allocation2 + $0x100] ss:$8 sps:$4 sm:$0xff]   ;;  %v3479_v46 = vld [vmem:[#allocation2 + $0x114] ss:$8 sps:$4 sm:$0xff]  }
  0xb0   :  { %v3477_v47 = vld [vmem:[#allocation2 + $0x110] ss:$8 sps:$4 sm:$0xff]   ;;  %v3482_v48 = vld [vmem:[#allocation2 + $0x124] ss:$8 sps:$4 sm:$0xff]   ;;  %v3480_v49 = vld [vmem:[#allocation2 + $0x120] ss:$8 sps:$4 sm:$0xff]  }
  0xb1   :  { %1009 = vmatpush1.bf16.msra.mxu0 %v3436_v10  ;;  %v342_v24 = vrot.slane %v320_v23, %v4129_v16  ;;  %v3485_v50 = vld [vmem:[#allocation2 + $0x134] ss:$8 sps:$4 sm:$0xff]   ;;  %v3483_v51 = vld [vmem:[#allocation2 + $0x130] ss:$8 sps:$4 sm:$0xff]   ;;  %v3488_v52 = vld [vmem:[#allocation2 + $0x144] ss:$8 sps:$4 sm:$0xff]  }
  0xb2   :  { %1010 = vmatprep.subr.bf16.mxu0 %v3437_v11  ;;  %v3486_v53 = vld [vmem:[#allocation2 + $0x140] ss:$8 sps:$4 sm:$0xff]   ;;  %v3491_v54 = vld [vmem:[#allocation2 + $0x154] ss:$8 sps:$4 sm:$0xff]   ;;  %v3489_v55 = vld [vmem:[#allocation2 + $0x150] ss:$8 sps:$4 sm:$0xff]   ;;  %v4146_v11 = vrot.slane %v305_v7, %v4129_v16 }
  0xb3   :  { %1034 = vmatprep.mubr.bf16.mxu0 %v342_v24  ;;  %v352_v44 = vcombine.high %v342_v24, %v342_v24  ;;  %v3494_v56 = vld [vmem:[#allocation2 + $0x164] ss:$8 sps:$4 sm:$0xff]   ;;  %v3492_v57 = vld [vmem:[#allocation2 + $0x160] ss:$8 sps:$4 sm:$0xff]   ;;  %v3497_v58 = vld [vmem:[#allocation2 + $0x174] ss:$8 sps:$4 sm:$0xff]  }
  0xb4   :  { %v3495_v59 = vld [vmem:[#allocation2 + $0x170] ss:$8 sps:$4 sm:$0xff]   ;;  %v3500_v60 = vld [vmem:[#allocation2 + $0x184] ss:$8 sps:$4 sm:$0xff]   ;;  %v3498_v61 = vld [vmem:[#allocation2 + $0x180] ss:$8 sps:$4 sm:$0xff]  }
  0xb5   :  { %1011 = vmatpush1.bf16.msra.mxu0 %v3439_v14  ;;  %v3503_v62 = vld [vmem:[#allocation2 + $0x194] ss:$8 sps:$4 sm:$0xff]   ;;  %v3501_v63 = vld [vmem:[#allocation2 + $0x190] ss:$8 sps:$4 sm:$0xff]   ;;  %v3506_v0 = vld [vmem:[#allocation2 + $0x1a4] ss:$8 sps:$4 sm:$0xff]  }
  0xb6   :  { %1012 = vmatprep.subr.bf16.mxu0 %v3440_v15  ;;  %v3504_v1 = vld [vmem:[#allocation2 + $0x1a0] ss:$8 sps:$4 sm:$0xff]   ;;  %v3509_v2 = vld [vmem:[#allocation2 + $0x1b4] ss:$8 sps:$4 sm:$0xff]   ;;  %v3507_v3 = vld [vmem:[#allocation2 + $0x1b0] ss:$8 sps:$4 sm:$0xff]   ;;  %v321_v15 = vcombine.high %v4146_v11, %v4146_v11 }
  0xb7   :  { %v3512_v4 = vld [vmem:[#allocation2 + $0x1c4] ss:$8 sps:$4 sm:$0xff]   ;;  %v3510_v5 = vld [vmem:[#allocation2 + $0x1c0] ss:$8 sps:$4 sm:$0xff]   ;;  %v3515_v6 = vld [vmem:[#allocation2 + $0x1d4] ss:$8 sps:$4 sm:$0xff]  }
  0xb8   :  { %v3513_v8 = vld [vmem:[#allocation2 + $0x1d0] ss:$8 sps:$4 sm:$0xff]   ;;  %v3518_v9 = vld [vmem:[#allocation2 + $0x1e4] ss:$8 sps:$4 sm:$0xff]   ;;  %v3516_v10 = vld [vmem:[#allocation2 + $0x1e0] ss:$8 sps:$4 sm:$0xff]   ;;  %v4153_v20 = vrot.slane %v321_v15, %v4129_v16 }
  0xb9   :  { %1013 = vmatpush1.bf16.msra.mxu0 %v3442_v17  ;;  %v3521_v13 = vld [vmem:[#allocation2 + $0x1f4] ss:$8 sps:$4 sm:$0xff]   ;;  %v3519_v14 = vld [vmem:[#allocation2 + $0x1f0] ss:$8 sps:$4 sm:$0xff]   ;;  %v3524_v17 = vld [vmem:[#allocation2 + $0x204] ss:$8 sps:$4 sm:$0xff]  }
  0xba   :  { %1014 = vmatprep.subr.bf16.mxu0 %v3443_v18  ;;  %v350_v18 = vcombine.high %v4140_v43, %v4140_v43  ;;  %v3522_v19 = vld [vmem:[#allocation2 + $0x200] ss:$8 sps:$4 sm:$0xff]   ;;  %v3581_v7 = vld [vmem:[#allocation2 + $0x334] ss:$8 sps:$4 sm:$0xff]   ;;  %vm1499_vm1 = vcmask 523264   ;;  %s4399_s20 = sld [smem:[#allocation21_spill]] }
  0xbb   :  { %v3619_v23 = vld [vmem:[%s4373_s4] sm:$0xff]   ;;  %v3620_v24 = vld [vmem:[%s4373_s4 + $0x48] sm:$0xff]   ;;  %vm1577_vm2 = vcmask 261120   ;;  %s4400_s28 = smov 64   ;;  %vm2954_vm3 = vcmask 785408  }
  0xbc   :  { %v3588_v15 = vld [vmem:[#allocation2 + $0x360] ss:$8 sps:$4 sm:$0xff]  }
  0xbd   :  { %1015 = vmatpush1.bf16.msra.mxu0 %v3445_v21  ;;  %v3527_v21 = vld [vmem:[#allocation2 + $0x214] ss:$8 sps:$4 sm:$0xff]  }
  0xbe   :  { %1016 = vmatprep.subr.bf16.mxu0 %v3446_v22  ;;  %v3618_v22 = vld [vmem:[%s4373_s4 + $0x40] sm:$0xff]  }
  0xbf   :  { %3296 = vmatprep.subr.bf16.mxu1 %v3618_v22  ;;  %v3597_v22 = vld [vmem:[#allocation2 + $0x390] ss:$8 sps:$4 sm:$0xff]  }
  0xc0   :  { %3297 = vmatpush3.bf16.msra.mxu1 %v3619_v23  ;;  %v3602_v23 = vld [vmem:[#allocation2 + $0x3a4] ss:$8 sps:$4 sm:$0xff]  }
  0xc1   :  { %1017 = vmatpush1.bf16.msra.mxu0 %v3448_v25  ;;  %v3525_v25 = vld [vmem:[#allocation2 + $0x210] ss:$8 sps:$4 sm:$0xff]   ;;  %3298 = vmatprep.subr.bf16.mxu1 %v3620_v24  ;;  %v3600_v24 = vld [vmem:[#allocation2 + $0x3a0] ss:$8 sps:$4 sm:$0xff]  }
  0xc2   :  { %1018 = vmatprep.subr.bf16.mxu0 %v3449_v26  ;;  %v3530_v26 = vld [vmem:[#allocation2 + $0x224] ss:$8 sps:$4 sm:$0xff]  }
  0xc5   :  { %1019 = vmatpush1.bf16.msra.mxu0 %v3451_v27  ;;  %v3621_v27 = vld [vmem:[%s4373_s4 + $0x8] sm:$0xff]  }
  0xc6   :  { %1020 = vmatprep.subr.bf16.mxu0 %v3452_v28  ;;  %v3622_v28 = vld [vmem:[%s4373_s4 + $0x50] sm:$0xff]   ;;  %3299 = vmatpush3.bf16.msra.mxu1 %v3621_v27  ;;  %v3608_v27 = vld [vmem:[#allocation2 + $0x3c4] ss:$8 sps:$4 sm:$0xff]  }
  0xc7   :  { %3300 = vmatprep.subr.bf16.mxu1 %v3622_v28  ;;  %v3606_v28 = vld [vmem:[#allocation2 + $0x3c0] ss:$8 sps:$4 sm:$0xff]  }
  0xc9   :  { %1021 = vmatpush1.bf16.msra.mxu0 %v3454_v29  ;;  %v3528_v29 = vld [vmem:[#allocation2 + $0x220] ss:$8 sps:$4 sm:$0xff]  }
  0xca   :  { %1022 = vmatprep.subr.bf16.mxu0 %v3455_v30  ;;  %v3533_v30 = vld [vmem:[#allocation2 + $0x234] ss:$8 sps:$4 sm:$0xff]  }
  0xcd   :  { %1023 = vmatpush1.bf16.msra.mxu0 %v3457_v31  ;;  %v3623_v31 = vld [vmem:[%s4373_s4 + $0x10] sm:$0xff]  }
  0xce   :  { %1024 = vmatprep.subr.bf16.mxu0 %v3458_v32  ;;  %v3624_v32 = vld [vmem:[%s4373_s4 + $0x58] sm:$0xff]   ;;  %3301 = vmatpush3.bf16.msra.mxu1 %v3623_v31  ;;  %v3614_v31 = vld [vmem:[#allocation2 + $0x3e4] ss:$8 sps:$4 sm:$0xff]  }
  0xcf   :  { %3302 = vmatprep.subr.bf16.mxu1 %v3624_v32  ;;  %v3612_v32 = vld [vmem:[#allocation2 + $0x3e0] ss:$8 sps:$4 sm:$0xff]  }
  0xd1   :  { %1025 = vmatpush1.bf16.msra.mxu0 %v3460_v33  ;;  %v3531_v33 = vld [vmem:[#allocation2 + $0x230] ss:$8 sps:$4 sm:$0xff]  }
  0xd2   :  { %1026 = vmatprep.subr.bf16.mxu0 %v3461_v34  ;;  %v3536_v34 = vld [vmem:[#allocation2 + $0x244] ss:$8 sps:$4 sm:$0xff]  }
  0xd5   :  { %1027 = vmatpush1.bf16.msra.mxu0 %v3463_v35  ;;  %v3625_v35 = vld [vmem:[%s4373_s4 + $0x18] sm:$0xff]  }
  0xd6   :  { %1028 = vmatprep.subr.bf16.mxu0 %v3464_v36  ;;  %v3626_v36 = vld [vmem:[%s4373_s4 + $0x60] sm:$0xff]   ;;  %3303 = vmatpush3.bf16.msra.mxu1 %v3625_v35 }
  0xd7   :  { %3304 = vmatprep.subr.bf16.mxu1 %v3626_v36  ;;  %v3630_v36 = vld [vmem:[%s4373_s4 + $0x70] sm:$0xff]  }
  0xd9   :  { %1029 = vmatpush1.bf16.msra.mxu0 %v3466_v37  ;;  %v3534_v37 = vld [vmem:[#allocation2 + $0x240] ss:$8 sps:$4 sm:$0xff]  }
  0xda   :  { %1030 = vmatprep.subr.bf16.mxu0 %v3467_v38  ;;  %v3539_v38 = vld [vmem:[#allocation2 + $0x254] ss:$8 sps:$4 sm:$0xff]  }
  0xdd   :  { %1031 = vmatpush1.bf16.msra.mxu0 %v3469_v39  ;;  %v3627_v39 = vld [vmem:[%s4373_s4 + $0x20] sm:$0xff]  }
  0xde   :  { %1032 = vmatprep.subr.bf16.mxu0 %v3470_v40  ;;  %v3628_v40 = vld [vmem:[%s4373_s4 + $0x68] sm:$0xff]   ;;  %3305 = vmatpush3.bf16.msra.mxu1 %v3627_v39  ;;  %v3633_v39 = vld [vmem:[%s4373_s4 + $0x38] sm:$0xff]  }
  0xdf   :  { %3306 = vmatprep.subr.bf16.mxu1 %v3628_v40  ;;  %v3911_v40 = vmov 0.0  }
  0xe1   :  { %1033 = vmatpush1.bf16.msra.mxu0 %v3472_v41  ;;  %v3537_v41 = vld [vmem:[#allocation2 + $0x250] ss:$8 sps:$4 sm:$0xff]  }
  0xe2   :  { %1043 = vmatprep.subr.bf16.mxu0 %v3476_v42  ;;  %v3542_v42 = vld [vmem:[#allocation2 + $0x264] ss:$8 sps:$4 sm:$0xff]  }
  0xe4   :  { %1035 = vmatmul.mubr.bf16.vlgmr.msra.gmra.mrb[0].mxu0 %v4140_v43  ;;  %v3629_v43 = vld [vmem:[%s4373_s4 + $0x28] sm:$0xff]  }
  0xe5   :  { %1044 = vmatpush1.bf16.msra.mxu0 %v3474_v45  ;;  %1075 = vmatprep.mubr.bf16.mxu0 %v352_v44  ;;  %v3540_v44 = vld [vmem:[#allocation2 + $0x260] ss:$8 sps:$4 sm:$0xff]   ;;  %v3545_v45 = vld [vmem:[#allocation2 + $0x274] ss:$8 sps:$4 sm:$0xff]  }
  0xe6   :  { %1045 = vmatprep.subr.bf16.mxu0 %v3479_v46  ;;  %3307 = vmatpush3.bf16.msra.mxu1 %v3629_v43  ;;  %v3543_v46 = vld [vmem:[#allocation2 + $0x270] ss:$8 sps:$4 sm:$0xff]   ;;  %v4218_v43 = vsub.s32 1, %v4126_v12 }
  0xe7   :  { %3308 = vmatprep.subr.bf16.mxu1 %v3630_v36 }
  0xe9   :  { %1046 = vmatpush1.bf16.msra.mxu0 %v3477_v47  ;;  %v3548_v47 = vld [vmem:[#allocation2 + $0x284] ss:$8 sps:$4 sm:$0xff]  }
  0xea   :  { %1047 = vmatprep.subr.bf16.mxu0 %v3482_v48  ;;  %v3546_v48 = vld [vmem:[#allocation2 + $0x280] ss:$8 sps:$4 sm:$0xff]  }
  0xed   :  { %1048 = vmatpush1.bf16.msra.mxu0 %v3480_v49  ;;  %v3551_v49 = vld [vmem:[#allocation2 + $0x294] ss:$8 sps:$4 sm:$0xff]  }
  0xee   :  { %1049 = vmatprep.subr.bf16.mxu0 %v3485_v50  ;;  %v3549_v50 = vld [vmem:[#allocation2 + $0x290] ss:$8 sps:$4 sm:$0xff]  }
  0xf1   :  { %1050 = vmatpush1.bf16.msra.mxu0 %v3483_v51  ;;  %v3554_v51 = vld [vmem:[#allocation2 + $0x2a4] ss:$8 sps:$4 sm:$0xff]  }
  0xf2   :  { %1051 = vmatprep.subr.bf16.mxu0 %v3488_v52  ;;  %v3552_v52 = vld [vmem:[#allocation2 + $0x2a0] ss:$8 sps:$4 sm:$0xff]  }
  0xf5   :  { %1052 = vmatpush1.bf16.msra.mxu0 %v3486_v53  ;;  %v3557_v53 = vld [vmem:[#allocation2 + $0x2b4] ss:$8 sps:$4 sm:$0xff]  }
  0xf6   :  { %1053 = vmatprep.subr.bf16.mxu0 %v3491_v54  ;;  %v3555_v54 = vld [vmem:[#allocation2 + $0x2b0] ss:$8 sps:$4 sm:$0xff]  }
  0xf9   :  { %1054 = vmatpush1.bf16.msra.mxu0 %v3489_v55  ;;  %v3560_v55 = vld [vmem:[#allocation2 + $0x2c4] ss:$8 sps:$4 sm:$0xff]  }
  0xfa   :  { %1055 = vmatprep.subr.bf16.mxu0 %v3494_v56  ;;  %v3558_v56 = vld [vmem:[#allocation2 + $0x2c0] ss:$8 sps:$4 sm:$0xff]  }
  0xfd   :  { %1056 = vmatpush1.bf16.msra.mxu0 %v3492_v57  ;;  %v3563_v57 = vld [vmem:[#allocation2 + $0x2d4] ss:$8 sps:$4 sm:$0xff]  }
  0xfe   :  { %1057 = vmatprep.subr.bf16.mxu0 %v3497_v58  ;;  %v3561_v58 = vld [vmem:[#allocation2 + $0x2d0] ss:$8 sps:$4 sm:$0xff]  }
 0x101   :  { %1058 = vmatpush1.bf16.msra.mxu0 %v3495_v59  ;;  %v3566_v59 = vld [vmem:[#allocation2 + $0x2e4] ss:$8 sps:$4 sm:$0xff]  }
 0x102   :  { %1059 = vmatprep.subr.bf16.mxu0 %v3500_v60  ;;  %v3564_v60 = vld [vmem:[#allocation2 + $0x2e0] ss:$8 sps:$4 sm:$0xff]  }
 0x105   :  { %1060 = vmatpush1.bf16.msra.mxu0 %v3498_v61  ;;  %v3569_v61 = vld [vmem:[#allocation2 + $0x2f4] ss:$8 sps:$4 sm:$0xff]  }
 0x106   :  { %1061 = vmatprep.subr.bf16.mxu0 %v3503_v62  ;;  %v3567_v62 = vld [vmem:[#allocation2 + $0x2f0] ss:$8 sps:$4 sm:$0xff]  }
 0x109   :  { %1062 = vmatpush1.bf16.msra.mxu0 %v3501_v63  ;;  %v3572_v63 = vld [vmem:[#allocation2 + $0x304] ss:$8 sps:$4 sm:$0xff]  }
 0x10a   :  { %1063 = vmatprep.subr.bf16.mxu0 %v3506_v0  ;;  %v4194_v0 = vrot.slane %v4146_v11, %v4129_v16  ;;  %v3587_v11 = vld [vmem:[#allocation2 + $0x354] ss:$8 sps:$4 sm:$0xff]  }
 0x10c   :  { %v351_v35 = vcombine.high %v4194_v0, %v4194_v0 }
 0x10d   :  { %1064 = vmatpush1.bf16.msra.mxu0 %v3504_v1  ;;  %v3570_v1 = vld [vmem:[#allocation2 + $0x300] ss:$8 sps:$4 sm:$0xff]  }
 0x10e   :  { %1065 = vmatprep.subr.bf16.mxu0 %v3509_v2  ;;  %v353_v2 = vcombine.high %v4153_v20, %v4153_v20 }
 0x111   :  { %1066 = vmatpush1.bf16.msra.mxu0 %v3507_v3  ;;  %v3575_v3 = vld [vmem:[#allocation2 + $0x314] ss:$8 sps:$4 sm:$0xff]  }
 0x112   :  { %1067 = vmatprep.subr.bf16.mxu0 %v3512_v4  ;;  %v3573_v4 = vld [vmem:[#allocation2 + $0x310] ss:$8 sps:$4 sm:$0xff]  }
 0x115   :  { %1068 = vmatpush1.bf16.msra.mxu0 %v3510_v5  ;;  %v3578_v5 = vld [vmem:[#allocation2 + $0x324] ss:$8 sps:$4 sm:$0xff]  }
 0x116   :  { %1069 = vmatprep.subr.bf16.mxu0 %v3515_v6  ;;  %v3576_v6 = vld [vmem:[#allocation2 + $0x320] ss:$8 sps:$4 sm:$0xff]  }
 0x119   :  { %1070 = vmatpush1.bf16.msra.mxu0 %v3513_v8  ;;  %v3579_v8 = vld [vmem:[#allocation2 + $0x330] ss:$8 sps:$4 sm:$0xff]  }
 0x11a   :  { %1071 = vmatprep.subr.bf16.mxu0 %v3518_v9  ;;  %v3584_v9 = vld [vmem:[#allocation2 + $0x344] ss:$8 sps:$4 sm:$0xff]  }
 0x11d   :  { %1072 = vmatpush1.bf16.msra.mxu0 %v3516_v10  ;;  %v3582_v10 = vld [vmem:[#allocation2 + $0x340] ss:$8 sps:$4 sm:$0xff]  }
 0x11e   :  { %1073 = vmatprep.subr.bf16.mxu0 %v3521_v13  ;;  %v3585_v13 = vld [vmem:[#allocation2 + $0x350] ss:$8 sps:$4 sm:$0xff]  }
 0x121   :  { %1074 = vmatpush1.bf16.msra.mxu0 %v3519_v14  ;;  %v3590_v14 = vld [vmem:[#allocation2 + $0x364] ss:$8 sps:$4 sm:$0xff]  }
 0x122   :  { %1084 = vmatprep.subr.bf16.mxu0 %v3524_v17  ;;  %v3593_v17 = vld [vmem:[#allocation2 + $0x374] ss:$8 sps:$4 sm:$0xff]  }
 0x124   :  { %1076 = vmatmul.mubr.bf16.vlgmr.msra.gmra.mrb[0].mxu0 %v350_v18  ;;  %v3591_v18 = vld [vmem:[#allocation2 + $0x370] ss:$8 sps:$4 sm:$0xff]  }
 0x125   :  { %1085 = vmatpush1.bf16.msra.mxu0 %v3522_v19  ;;  %1116 = vmatprep.mubr.bf16.mxu0 %v4153_v20  ;;  %v3596_v19 = vld [vmem:[#allocation2 + $0x384] ss:$8 sps:$4 sm:$0xff]   ;;  %v3594_v20 = vld [vmem:[#allocation2 + $0x380] ss:$8 sps:$4 sm:$0xff]  }
 0x126   :  { %1086 = vmatprep.subr.bf16.mxu0 %v3527_v21  ;;  %v3599_v21 = vld [vmem:[#allocation2 + $0x394] ss:$8 sps:$4 sm:$0xff]  }
 0x129   :  { %1087 = vmatpush1.bf16.msra.mxu0 %v3525_v25  ;;  %v3605_v25 = vld [vmem:[#allocation2 + $0x3b4] ss:$8 sps:$4 sm:$0xff]  }
 0x12a   :  { %1088 = vmatprep.subr.bf16.mxu0 %v3530_v26  ;;  %v3603_v26 = vld [vmem:[#allocation2 + $0x3b0] ss:$8 sps:$4 sm:$0xff]  }
 0x12d   :  { %1089 = vmatpush1.bf16.msra.mxu0 %v3528_v29  ;;  %v3611_v29 = vld [vmem:[#allocation2 + $0x3d4] ss:$8 sps:$4 sm:$0xff]  }
 0x12e   :  { %1090 = vmatprep.subr.bf16.mxu0 %v3533_v30  ;;  %v3609_v30 = vld [vmem:[#allocation2 + $0x3d0] ss:$8 sps:$4 sm:$0xff]  }
 0x131   :  { %1091 = vmatpush1.bf16.msra.mxu0 %v3531_v33  ;;  %v3617_v33 = vld [vmem:[#allocation2 + $0x3f4] ss:$8 sps:$4 sm:$0xff]  }
 0x132   :  { %1092 = vmatprep.subr.bf16.mxu0 %v3536_v34  ;;  %v3615_v34 = vld [vmem:[#allocation2 + $0x3f0] ss:$8 sps:$4 sm:$0xff]  }
 0x135   :  { %1093 = vmatpush1.bf16.msra.mxu0 %v3534_v37  ;;  %v3631_v37 = vld [vmem:[%s4373_s4 + $0x30] sm:$0xff]  }
 0x136   :  { %1094 = vmatprep.subr.bf16.mxu0 %v3539_v38  ;;  %3309 = vmatpush3.bf16.msra.mxu1 %v3631_v37  ;;  %v3632_v38 = vld [vmem:[%s4373_s4 + $0x78] sm:$0xff]  }
 0x137   :  { %3310 = vmatprep.subr.bf16.mxu1 %v3632_v38  ;;  %v3648_v38 = vld [vmem:[%s4381_s12] sm:$0xff]  }
 0x139   :  { %1095 = vmatpush1.bf16.msra.mxu0 %v3537_v41  ;;  %v4215_v41 = vsub.s32 0, %v4126_v12 }
 0x13a   :  { %1096 = vmatprep.subr.bf16.mxu0 %v3542_v42  ;;  %3311 = vmatpush3.bf16.msra.mxu1 %v3633_v39  ;;  %v292_v42 = vld [vmem:[#allocation4] sm:$0x3] }
 0x13b   :  { %3340 = vmatprep.subr.bf16.mxu1 %v3911_v40 }
 0x13d   :  { %1097 = vmatpush1.bf16.msra.mxu0 %v3540_v44  ;;  %v297_v44 = vrot.slane %v292_v42, %v4215_v41 }
 0x13e   :  { %1098 = vmatprep.subr.bf16.mxu0 %v3545_v45  ;;  %v301_v45 = vrot.slane %v292_v42, %v4218_v43  ;;  %v3649_v42 = vld [vmem:[%s4381_s12 + $0x8] sm:$0xff]  }
 0x141   :  { %1099 = vmatpush1.bf16.msra.mxu0 %v3543_v46 }
 0x142   :  { %1100 = vmatprep.subr.bf16.mxu0 %v3548_v47 }
 0x145   :  { %1101 = vmatpush1.bf16.msra.mxu0 %v3546_v48 }
 0x146   :  { %1102 = vmatprep.subr.bf16.mxu0 %v3551_v49 }
 0x149   :  { %1103 = vmatpush1.bf16.msra.mxu0 %v3549_v50 }
 0x14a   :  { %1104 = vmatprep.subr.bf16.mxu0 %v3554_v51 }
 0x14d   :  { %1105 = vmatpush1.bf16.msra.mxu0 %v3552_v52 }
 0x14e   :  { %1106 = vmatprep.subr.bf16.mxu0 %v3557_v53 }
 0x151   :  { %1107 = vmatpush1.bf16.msra.mxu0 %v3555_v54 }
 0x152   :  { %1108 = vmatprep.subr.bf16.mxu0 %v3560_v55  ;;  %v3634_v55 = vld [vmem:[%s4375_s6] sm:$0xff]  }
 0x155   :  { %1109 = vmatpush1.bf16.msra.mxu0 %v3558_v56 }
 0x156   :  { %1110 = vmatprep.subr.bf16.mxu0 %v3563_v57  ;;  %v3635_v57 = vld [vmem:[%s4375_s6 + $0x8] sm:$0xff]  }
 0x159   :  { %1111 = vmatpush1.bf16.msra.mxu0 %v3561_v58  ;;  %v3636_v58 = vld [vmem:[%s4375_s6 + $0x10] sm:$0xff]  }
 0x15a   :  { %1112 = vmatprep.subr.bf16.mxu0 %v3566_v59  ;;  %v3637_v59 = vld [vmem:[%s4375_s6 + $0x18] sm:$0xff]  }
 0x15d   :  { %1113 = vmatpush1.bf16.msra.mxu0 %v3564_v60  ;;  %v3638_v60 = vld [vmem:[%s4375_s6 + $0x20] sm:$0xff]  }
 0x15e   :  { %1114 = vmatprep.subr.bf16.mxu0 %v3569_v61  ;;  %v3639_v61 = vld [vmem:[%s4375_s6 + $0x28] sm:$0xff]  }
 0x161   :  { %1115 = vmatpush1.bf16.msra.mxu0 %v3567_v62  ;;  %v3640_v62 = vld [vmem:[%s4375_s6 + $0x30] sm:$0xff]  }
 0x162   :  { %1125 = vmatprep.subr.bf16.mxu0 %v3572_v63  ;;  %v3641_v63 = vld [vmem:[%s4375_s6 + $0x38] sm:$0xff]  }
 0x164   :  { %1117 = vmatmul.mubr.bf16.vlgmr.msra.gmra.mrb[0].mxu0 %v4194_v0 }
 0x165   :  { %1126 = vmatpush1.bf16.msra.mxu0 %v3570_v1  ;;  %1157 = vmatprep.mubr.bf16.mxu0 %v353_v2  ;;  %v3098_v1 = vld [vmem:[#allocation6] ss:$0 sm:$0xff] }
 0x166   :  { %1127 = vmatprep.subr.bf16.mxu0 %v3575_v3 }
 0x169   :  { %1128 = vmatpush1.bf16.msra.mxu0 %v3573_v4 }
 0x16a   :  { %1129 = vmatprep.subr.bf16.mxu0 %v3578_v5 }
 0x16d   :  { %1130 = vmatpush1.bf16.msra.mxu0 %v3576_v6 }
 0x16e   :  { %1131 = vmatprep.subr.bf16.mxu0 %v3581_v7 }
 0x171   :  { %1132 = vmatpush1.bf16.msra.mxu0 %v3579_v8  ;;  %v3642_v8 = vld [vmem:[%s4377_s8] sm:$0xff]  }
 0x172   :  { %1133 = vmatprep.subr.bf16.mxu0 %v3584_v9 }
 0x175   :  { %1134 = vmatpush1.bf16.msra.mxu0 %v3582_v10  ;;  %v3643_v10 = vld [vmem:[%s4377_s8 + $0x8] sm:$0xff]  }
 0x176   :  { %1135 = vmatprep.subr.bf16.mxu0 %v3587_v11  ;;  %v3644_v11 = vld [vmem:[%s4377_s8 + $0x10] sm:$0xff]  }
 0x179   :  { %1136 = vmatpush1.bf16.msra.mxu0 %v3585_v13  ;;  %v3645_v13 = vld [vmem:[%s4377_s8 + $0x18] sm:$0xff]   ;;  %s3913_s8 = smov 96  }
 0x17a   :  { %1137 = vmatprep.subr.bf16.mxu0 %v3590_v14  ;;  %v3115_v14 = vld [vmem:[#allocation7] ss:$0 sm:$0xff] }
 0x17d   :  { %1138 = vmatpush1.bf16.msra.mxu0 %v3588_v15 }
 0x17e   :  { %1139 = vmatprep.subr.bf16.mxu0 %v3593_v17 }
 0x181   :  { %1140 = vmatpush1.bf16.msra.mxu0 %v3591_v18 }
 0x182   :  { %1141 = vmatprep.subr.bf16.mxu0 %v3596_v19 }
 0x185   :  { %1142 = vmatpush1.bf16.msra.mxu0 %v3594_v20 }
 0x186   :  { %1143 = vmatprep.subr.bf16.mxu0 %v3599_v21 }
 0x189   :  { %1144 = vmatpush1.bf16.msra.mxu0 %v3597_v22 }
 0x18a   :  { %1145 = vmatprep.subr.bf16.mxu0 %v3602_v23  ;;  %v3646_v23 = vld [vmem:[#allocation10] sm:$0xff]  }
 0x18d   :  { %1146 = vmatpush1.bf16.msra.mxu0 %v3600_v24  ;;  %v3124_v24 = vld [vmem:[#allocation9] ss:$0 sm:$0xff] }
 0x18e   :  { %1147 = vmatprep.subr.bf16.mxu0 %v3605_v25 }
 0x191   :  { %1148 = vmatpush1.bf16.msra.mxu0 %v3603_v26 }
 0x192   :  { %1149 = vmatprep.subr.bf16.mxu0 %v3608_v27 }
 0x195   :  { %1150 = vmatpush1.bf16.msra.mxu0 %v3606_v28 }
 0x196   :  { %1151 = vmatprep.subr.bf16.mxu0 %v3611_v29 }
 0x199   :  { %1152 = vmatpush1.bf16.msra.mxu0 %v3609_v30 }
 0x19a   :  { %1153 = vmatprep.subr.bf16.mxu0 %v3614_v31 }
 0x19d   :  { %1154 = vmatpush1.bf16.msra.mxu0 %v3612_v32  ;;  %v3647_v32 = vld [vmem:[#allocation10 + $0x8] sm:$0xff]  }
 0x19e   :  { %1155 = vmatprep.subr.bf16.mxu0 %v3617_v33 }
 0x1a1   :  { %1156 = vmatpush1.bf16.msra.mxu0 %v3615_v34  ;;  %v1546_v34 = vld [vmem:[%s4399_s20] sm:$0x3] }
 0x1a4   :  { %1158 = vmatmul.mubr.bf16.vlgmr.msra.gmra.mrb[0].mxu0 %v351_v35 }
 0x277   :  { %v1159_v46 = vpop.f32.mrb[0].mxu0 }
 0x278   :  { %v3392_v47 = vadd.f32 %v1159_v46, %v297_v44  ;;  %v1161_v48 = vpop.f32.mrb[1].mxu0  ;;  %v3650_v44 = vld [vmem:[%s4381_s12 + $0x10] sm:$0xff]   ;;  %v3654_v46 = vld [vmem:[#allocation12 + $0x4] ss:$8 sps:$4 sm:$0xff]  }
 0x279   :  { %v3393_v49 = vadd.f32 %v1161_v48, %v301_v45  ;;  %v1163_v50 = vpop.f32.mrb[2].mxu0  ;;  %v3651_v45 = vld [vmem:[%s4381_s12 + $0x18] sm:$0xff]  }
 0x27a   :  { %v1166_v51 = vmax.f32 %v3392_v47, 0.0  ;;  %v1164_v52 = vpop.f32.mrb[3].mxu0 }
 0x27b   :  { %v1167_v53 = vmax.f32 %v3393_v49, 0.0 }
 0x27c   :  { %v1168_v56 = vpack.c.bf16 %v1166_v51, %v1166_v51 }
 0x27d   :  { %v1169_v54 = vpack.c.bf16 %v1167_v53, %v1167_v53 }
 0x27f   :  { %1337 = vmatprep.mubr.bf16.mxu1 %v1169_v54 }
 0x280   :  { %1338 = vmatmul.mubr.bf16.vlgmr.msra.gmra.mrb[0].mxu1 %v1168_v56  ;;  %v3652_v56 = vld [vmem:[#allocation12] ss:$8 sps:$4 sm:$0xff]  }
 0x281   :  { %3341 = vmatpush3.bf16.msra.mxu1 %v3634_v55  ;;  %3356 = vmatprep.mubr.msk.bf16.mxu1 %vm3912_vm0, %v3911_v40 }
 0x282   :  { %3342 = vmatprep.subr.bf16.mxu1 %v3911_v40 }
 0x285   :  { %3343 = vmatpush3.bf16.msra.mxu1 %v3635_v57 }
 0x286   :  { %3344 = vmatprep.subr.bf16.mxu1 %v3911_v40 }
 0x289   :  { %3345 = vmatpush3.bf16.msra.mxu1 %v3636_v58  ;;  %v3657_v58 = vld [vmem:[#allocation12 + $0x14] ss:$8 sps:$4 sm:$0xff]  }
 0x28a   :  { %3346 = vmatprep.subr.bf16.mxu1 %v3911_v40 }
 0x28d   :  { %3347 = vmatpush3.bf16.msra.mxu1 %v3637_v59  ;;  %v3655_v59 = vld [vmem:[#allocation12 + $0x10] ss:$8 sps:$4 sm:$0xff]  }
 0x28e   :  { %3348 = vmatprep.subr.bf16.mxu1 %v3911_v40 }
 0x291   :  { %3349 = vmatpush3.bf16.msra.mxu1 %v3638_v60  ;;  %v3660_v60 = vld [vmem:[#allocation12 + $0x24] ss:$8 sps:$4 sm:$0xff]  }
 0x292   :  { %3350 = vmatprep.subr.bf16.mxu1 %v3911_v40 }
 0x295   :  { %3351 = vmatpush3.bf16.msra.mxu1 %v3639_v61  ;;  %v3658_v61 = vld [vmem:[#allocation12 + $0x20] ss:$8 sps:$4 sm:$0xff]  }
 0x296   :  { %3352 = vmatprep.subr.bf16.mxu1 %v3911_v40 }
 0x299   :  { %3353 = vmatpush3.bf16.msra.mxu1 %v3640_v62  ;;  %v3663_v62 = vld [vmem:[#allocation12 + $0x34] ss:$8 sps:$4 sm:$0xff]  }
 0x29a   :  { %3354 = vmatprep.subr.bf16.mxu1 %v3911_v40 }
 0x29d   :  { %3355 = vmatpush3.bf16.msra.mxu1 %v3641_v63  ;;  %v3661_v63 = vld [vmem:[#allocation12 + $0x30] ss:$8 sps:$4 sm:$0xff]  }
 0x29e   :  { %3360 = vmatprep.subr.bf16.mxu1 %v3911_v40 }
 0x353   :  { %v3312_v0 = vpop.f32.mrb[0].mxu1 }
 0x354   :  { %v3313_v2 = vpop.f32.mrb[1].mxu1 }
 0x355   :  { %v3314_v3 = vadd.f32 %v3313_v2, %v3312_v0  ;;  %v3315_v4 = vpop.f32.mrb[2].mxu1  ;;  %v3666_v0 = vld [vmem:[#allocation12 + $0x44] ss:$8 sps:$4 sm:$0xff]   ;;  %v3669_v2 = vld [vmem:[#allocation12 + $0x54] ss:$8 sps:$4 sm:$0xff]  }
 0x356   :  { %v3316_v5 = vpop.f32.mrb[3].mxu1  ;;  %v3672_v4 = vld [vmem:[#allocation12 + $0x64] ss:$8 sps:$4 sm:$0xff]  }
 0x357   :  { %v1340_v6 = vadd.f32 %v3314_v3, %v3098_v1  ;;  %v3664_v1 = vld [vmem:[#allocation12 + $0x40] ss:$8 sps:$4 sm:$0xff]   ;;  %v3667_v3 = vld [vmem:[#allocation12 + $0x50] ss:$8 sps:$4 sm:$0xff]  }
 0x358   :  { %v3670_v5 = vld [vmem:[#allocation12 + $0x60] ss:$8 sps:$4 sm:$0xff]  }
 0x359   :  { %v1345_v7 = vmax.f32 %v1340_v6, 0.0  ;;  %v3675_v6 = vld [vmem:[#allocation12 + $0x74] ss:$8 sps:$4 sm:$0xff]  }
 0x35b   :  { %v1346_v9 = vpack.c.bf16 %v1345_v7, %v1345_v7  ;;  %v3673_v7 = vld [vmem:[#allocation12 + $0x70] ss:$8 sps:$4 sm:$0xff]  }
 0x35d   :  { %3357 = vmatmul.mubr.bf16.vlgmr.msra.gmra.mrb[4].mxu1 %v1346_v9  ;;  %v4308_v9 = vld [vmem:[#allocation13] sm:$0xff] }
 0x35e   :  { %3361 = vmatpush3.bf16.msra.mxu1 %v3642_v8  ;;  %3368 = vmatprep.mubr.msk.bf16.mxu1 %vm3912_vm0, %v3911_v40  ;;  %v3914_v8 = vmov 0  }
 0x35f   :  { %3362 = vmatprep.subr.bf16.mxu1 %v3911_v40 }
 0x362   :  { %3363 = vmatpush3.bf16.msra.mxu1 %v3643_v10  ;;  %v4310_v10 = vld [vmem:[#allocation13 + $0x20] sm:$0xff] }
 0x363   :  { %3364 = vmatprep.subr.bf16.mxu1 %v3911_v40 }
 0x366   :  { %3365 = vmatpush3.bf16.msra.mxu1 %v3644_v11  ;;  %v3156_v11 = vcombine.low %v4308_v9, %v4310_v10 }
 0x367   :  { %3366 = vmatprep.subr.bf16.mxu1 %v3911_v40 }
 0x36a   :  { %3367 = vmatpush3.bf16.msra.mxu1 %v3645_v13  ;;  %v3157_v13 = vcombine.high %v4308_v9, %v4310_v10 }
 0x36b   :  { %3372 = vmatprep.subr.bf16.mxu1 %v3911_v40 }
 0x430   :  { %v1452_v15 = vpop.f32.mrb[4].mxu1 }
 0x431   :  { %v1453_v17 = vadd.f32 %v3115_v14, %v1452_v15  ;;  %v3358_v18 = vpop.f32.mrb[5].mxu1  ;;  %v1862_v14 = vld [vmem:[#allocation13 + $0x10] sm:$0xff] }
 0x432   :  { %v1455_v19 = vpop.f32.mrb[6].mxu1  ;;  %v1866_v15 = vld [vmem:[#allocation13 + $0x30] sm:$0xff] }
 0x433   :  { %v1458_v20 = vmax.f32 %v1453_v17, 0.0  ;;  %v3359_v21 = vpop.f32.mrb[7].mxu1  ;;  %v3160_v17 = vcombine.low %v1862_v14, %v1866_v15  ;;  %v3161_v18 = vcombine.high %v1862_v14, %v1866_v15  ;;  %v1870_v19 = vld [vmem:[#allocation13 + $0x50] sm:$0xff] }
 0x435   :  { %v1459_v22 = vpack.c.bf16 %v1458_v20, %v1458_v20  ;;  %2752 = vmatprep.subr.bf16.mxu0 %v3161_v18  ;;  %v1874_v20 = vld [vmem:[#allocation13 + $0x70] sm:$0xff] }
 0x436   :  { %2753 = vmatpush1.bf16.msra.mxu0 %v3160_v17  ;;  %v3168_v21 = vcombine.low %v1870_v19, %v1874_v20 }
 0x437   :  { %3369 = vmatmul.mubr.msk.bf16.vlgmr.msra.gmra.mrb[8].mxu1 %vm1499_vm1, %v1459_v22  ;;  %v3169_v22 = vcombine.high %v1870_v19, %v1874_v20  ;;  %v1868_v19 = vld [vmem:[#allocation13 + $0x40] sm:$0xff] }
 0x438   :  { %3376 = vmatprep.mubr.msk.bf16.mxu1 %vm3912_vm0, %v3911_v40  ;;  %3373 = vmatpush3.bf16.msra.mxu1 %v3646_v23  ;;  %v1878_v23 = vld [vmem:[#allocation13 + $0x90] sm:$0xff]  ;;  %v1872_v20 = vld [vmem:[#allocation13 + $0x60] sm:$0xff] }
 0x439   :  { %3374 = vmatprep.subr.bf16.mxu1 %v3911_v40  ;;  %2754 = vmatprep.subr.bf16.mxu0 %v3169_v22 }
 0x43a   :  { %2755 = vmatpush1.bf16.msra.mxu0 %v3168_v21 }
 0x43c   :  { %3375 = vmatpush3.bf16.msra.mxu1 %v3647_v32  ;;  %v1898_v32 = vld [vmem:[#allocation13 + $0x130] sm:$0xff] }
 0x43d   :  { %3380 = vmatprep.subr.bf16.mxu1 %v3911_v40 }
 0x50a   :  { %v1537_v25 = vpop.f32.mrb[8].mxu1 }
 0x50b   :  { %v1538_v26 = vadd.f32 %v3124_v24, %v1537_v25  ;;  %v3370_v27 = vpop.f32.mrb[9].mxu1  ;;  %v1882_v24 = vld [vmem:[#allocation13 + $0xb0] sm:$0xff] }
 0x50c   :  { %v1540_v28 = vpop.f32.mrb[10].mxu1  ;;  %v3176_v25 = vcombine.low %v1878_v23, %v1882_v24  ;;  %v1886_v27 = vld [vmem:[#allocation13 + $0xd0] sm:$0xff] }
 0x50d   :  { %v1543_v29 = vmul.f32 0.5, %v1538_v26  ;;  %v3371_v30 = vpop.f32.mrb[11].mxu1  ;;  %v1890_v28 = vld [vmem:[#allocation13 + $0xf0] sm:$0xff] }
 0x50e   :  { %v3185_v30 = vcombine.high %v1886_v27, %v1890_v28 }
 0x50f   :  { %v1544_v31 = vmul.f32 1.442695, %v1543_v29  ;;  %v3184_v29 = vcombine.low %v1886_v27, %v1890_v28  ;;  %v3164_v27 = vcombine.low %v1868_v19, %v1872_v20 }
 0x511   :  { %3676 = vpow2.f32 %v1544_v31  ;;  %v1894_v31 = vld [vmem:[#allocation13 + $0x110] sm:$0xff] }
 0x51b   :  { %v3677_v33 = vpop.eup %3676 }
 0x51c   :  { %1548 = vrot.lane.b32.xlu0 %v3677_v33, %s3913_s8  ;;  %v3192_v33 = vcombine.low %v1894_v31, %v1898_v32 }
 0x58e   :  { %v1549_v35 = vpop.permute.xlu0 %1548 }
 0x58f   :  { %v1551_v36 = vmul.f32 %v1549_v35, %v1546_v34  ;;  %v3193_v34 = vcombine.high %v1894_v31, %v1898_v32  ;;  %v1902_v35 = vld [vmem:[#allocation13 + $0x150] sm:$0xff] }
 0x591   :  { %v1552_v37 = vadd.f32 %v1551_v36, %v1538_v26  ;;  %v1906_v36 = vld [vmem:[#allocation13 + $0x170] sm:$0xff] }
 0x593   :  { %2950 = vrot.lane.b32.xlu0 %v1552_v37, %s4400_s28  ;;  %v1553_v39 = vpack.c.bf16 %v1552_v37, %v1552_v37  ;;  %v3200_v37 = vcombine.low %v1902_v35, %v1906_v36 }
 0x595   :  { %3377 = vmatmul.mubr.msk.bf16.vlgmr.msra.gmra.mrb[12].mxu1 %vm1577_vm2, %v1553_v39  ;;  %v1910_v39 = vld [vmem:[#allocation13 + $0x190] sm:$0xff] }
 0x596   :  { %3381 = vmatpush3.bf16.msra.mxu1 %v3648_v38  ;;  %3388 = vmatprep.mubr.msk.bf16.mxu1 %vm3912_vm0, %v3911_v40  ;;  %v3201_v38 = vcombine.high %v1902_v35, %v1906_v36 }
 0x597   :  { %3382 = vmatprep.subr.bf16.mxu1 %v3911_v40 }
 0x59a   :  { %3383 = vmatpush3.bf16.msra.mxu1 %v3649_v42  ;;  %v1914_v42 = vld [vmem:[#allocation13 + $0x1b0] sm:$0xff] }
 0x59b   :  { %3384 = vmatprep.subr.bf16.mxu1 %v3911_v40 }
 0x59e   :  { %3385 = vmatpush3.bf16.msra.mxu1 %v3650_v44  ;;  %v3208_v44 = vcombine.low %v1910_v39, %v1914_v42 }
 0x59f   :  { %3386 = vmatprep.subr.bf16.mxu1 %v3911_v40  ;;  %v3130_v40 = vld [vmem:[%s4380_s11] ss:$0 sm:$0xff] }
 0x5a2   :  { %3387 = vmatpush3.bf16.msra.mxu1 %v3651_v45  ;;  %v3209_v45 = vcombine.high %v1910_v39, %v1914_v42  ;;  %v1912_v39 = vld [vmem:[#allocation13 + $0x1a0] sm:$0xff] }
 0x5a3   :  { %1815 = vmatprep.subr.bf16.mxu1 %v3654_v46  ;;  %v1918_v46 = vld [vmem:[#allocation13 + $0x1d0] sm:$0xff] }
 0x605   :  { %v2951_v47 = vpop.permute.xlu0 %2950 }
 0x606   :  { %v2953_v48 = vsel %vm1499_vm1, %v1538_v26, %v2951_v47  ;;  %v3177_v26 = vcombine.high %v1878_v23, %v1882_v24  ;;  %v1922_v47 = vld [vmem:[#allocation13 + $0x1f0] sm:$0xff]  ;;  %v3165_v24 = vcombine.high %v1868_v19, %v1872_v20 }
 0x607   :  { %v2955_v49 = vsel %vm2954_vm3, %v2953_v48, 0.0  ;;  %v3216_v48 = vcombine.low %v1918_v46, %v1922_v47 }
 0x608   :  { %2956 = vst [vmem:[%s4388_s19] sm:$0x3] %v2955_v49  ;;  %2756 = vmatprep.subr.bf16.mxu0 %v3177_v26  ;;  %v3217_v49 = vcombine.high %v1918_v46, %v1922_v47  ;;  %v1880_v26 = vld [vmem:[#allocation13 + $0xa0] sm:$0xff] }
 0x609   :  { %2757 = vmatpush1.bf16.msra.mxu0 %v3176_v25  ;;  %v1876_v25 = vld [vmem:[#allocation13 + $0x80] sm:$0xff] }
 0x60a   :  { %2758 = vmatprep.subr.bf16.mxu0 %v3185_v30  ;;  %v3173_v28 = vcombine.high %v1876_v25, %v1880_v26  ;;  %v1888_v30 = vld [vmem:[#allocation13 + $0xe0] sm:$0xff]  ;;  %v3172_v31 = vcombine.low %v1876_v25, %v1880_v26  ;;  %v1982_v25 = vld [vmem:[#allocation13 + $0x3d0] sm:$0xff] }
 0x60b   :  { %v1920_v46 = vld [vmem:[#allocation13 + $0x1e0] sm:$0xff]  ;;  %v1986_v26 = vld [vmem:[#allocation13 + $0x3f0] sm:$0xff] }
 0x60d   :  { %2759 = vmatpush1.bf16.msra.mxu0 %v3184_v29  ;;  %v1884_v29 = vld [vmem:[#allocation13 + $0xc0] sm:$0xff] }
 0x60e   :  { %2760 = vmatprep.subr.bf16.mxu0 %v3193_v34  ;;  %v3181_v32 = vcombine.high %v1884_v29, %v1888_v30  ;;  %v1896_v34 = vld [vmem:[#allocation13 + $0x120] sm:$0xff]  ;;  %v3180_v35 = vcombine.low %v1884_v29, %v1888_v30  ;;  %v3280_v29 = vcombine.low %v1982_v25, %v1986_v26  ;;  %v1861_v30 = vld [vmem:[#allocation13 + $0x8] sm:$0xff] }
 0x611   :  { %2761 = vmatpush1.bf16.msra.mxu0 %v3192_v33  ;;  %v1892_v33 = vld [vmem:[#allocation13 + $0x100] sm:$0xff] }
 0x612   :  { %2762 = vmatprep.subr.bf16.mxu0 %v3201_v38  ;;  %v3189_v36 = vcombine.high %v1892_v33, %v1896_v34  ;;  %v1904_v38 = vld [vmem:[#allocation13 + $0x160] sm:$0xff]  ;;  %v3188_v9 = vcombine.low %v1892_v33, %v1896_v34  ;;  %v1723_v34 = vld [vmem:[%s4384_s15] sm:$0x3] }
 0x615   :  { %2763 = vmatpush1.bf16.msra.mxu0 %v3200_v37  ;;  %v1900_v37 = vld [vmem:[#allocation13 + $0x140] sm:$0xff] }
 0x616   :  { %2764 = vmatprep.subr.bf16.mxu0 %v3209_v45  ;;  %v3197_v10 = vcombine.high %v1900_v37, %v1904_v38  ;;  %v3196_v42 = vcombine.low %v1900_v37, %v1904_v38  ;;  %v1916_v45 = vld [vmem:[#allocation13 + $0x1c0] sm:$0xff] }
 0x619   :  { %2765 = vmatpush1.bf16.msra.mxu0 %v3208_v44 }
 0x61a   :  { %2766 = vmatprep.subr.bf16.mxu0 %v3217_v49  ;;  %v1924_v49 = vld [vmem:[#allocation13 + $0x200] sm:$0xff] }
 0x61d   :  { %2767 = vmatpush1.bf16.msra.mxu0 %v3216_v48  ;;  %v3213_v48 = vcombine.high %v1916_v45, %v1920_v46 }
 0x668   :  { %v1615_v50 = vpop.f32.mrb[12].mxu1 }
 0x669   :  { %v1616_v51 = vadd.f32 %v3130_v40, %v1615_v50  ;;  %v3378_v52 = vpop.f32.mrb[13].mxu1  ;;  %v1926_v40 = vld [vmem:[#allocation13 + $0x210] sm:$0xff] }
 0x66a   :  { %v1618_v53 = vpop.f32.mrb[14].mxu1  ;;  %v1930_v50 = vld [vmem:[#allocation13 + $0x230] sm:$0xff] }
 0x66b   :  { %v1621_v54 = vmax.f32 %v1616_v51, 0.0  ;;  %v3379_v55 = vpop.f32.mrb[15].mxu1  ;;  %v3224_v51 = vcombine.low %v1926_v40, %v1930_v50  ;;  %v3225_v52 = vcombine.high %v1926_v40, %v1930_v50  ;;  %v1934_v53 = vld [vmem:[#allocation13 + $0x250] sm:$0xff]  ;;  %v1928_v40 = vld [vmem:[#allocation13 + $0x220] sm:$0xff]  ;;  %v3212_v50 = vcombine.low %v1916_v45, %v1920_v46  ;;  %v1869_v45 = vld [vmem:[#allocation13 + $0x48] sm:$0xff] }
 0x66c   :  { %v1873_v46 = vld [vmem:[#allocation13 + $0x68] sm:$0xff] }
 0x66d   :  { %v1622_v57 = vpack.c.bf16 %v1621_v54, %v1621_v54  ;;  %2768 = vmatprep.subr.bf16.mxu0 %v3225_v52  ;;  %v1938_v54 = vld [vmem:[#allocation13 + $0x270] sm:$0xff]  ;;  %v1932_v52 = vld [vmem:[#allocation13 + $0x240] sm:$0xff] }
 0x66e   :  { %2769 = vmatpush1.bf16.msra.mxu0 %v3224_v51  ;;  %v3232_v55 = vcombine.low %v1934_v53, %v1938_v54  ;;  %v3221_v51 = vcombine.high %v1924_v49, %v1928_v40 }
 0x66f   :  { %3389 = vmatmul.mubr.msk.bf16.vlgmr.msra.gmra.mrb[16].mxu1 %vm1499_vm1, %v1622_v57  ;;  %v1942_v57 = vld [vmem:[#allocation13 + $0x290] sm:$0xff] }
 0x670   :  { %1816 = vmatpush1.bf16.msra.mxu1 %v3652_v56  ;;  %1847 = vmatprep.mubr.bf16.mxu1 %v3914_v8  ;;  %v3233_v56 = vcombine.high %v1934_v53, %v1938_v54  ;;  %v1936_v53 = vld [vmem:[#allocation13 + $0x260] sm:$0xff]  ;;  %v3220_v54 = vcombine.low %v1924_v49, %v1928_v40  ;;  %v3167_v49 = vcombine.high %v1869_v45, %v1873_v46  ;;  %v1877_v40 = vld [vmem:[#allocation13 + $0x88] sm:$0xff] }
 0x671   :  { %1817 = vmatprep.subr.bf16.mxu1 %v3657_v58  ;;  %v1946_v58 = vld [vmem:[#allocation13 + $0x2b0] sm:$0xff] }
 0x672   :  { %2770 = vmatprep.subr.bf16.mxu0 %v3233_v56  ;;  %v1940_v56 = vld [vmem:[#allocation13 + $0x280] sm:$0xff] }
 0x673   :  { %2771 = vmatpush1.bf16.msra.mxu0 %v3232_v55  ;;  %v3229_v55 = vcombine.high %v1932_v52, %v1936_v53 }
 0x674   :  { %1818 = vmatpush1.bf16.msra.mxu1 %v3655_v59  ;;  %v3240_v59 = vcombine.low %v1942_v57, %v1946_v58 }
 0x675   :  { %1819 = vmatprep.subr.bf16.mxu1 %v3660_v60  ;;  %v3241_v60 = vcombine.high %v1942_v57, %v1946_v58  ;;  %v1944_v57 = vld [vmem:[#allocation13 + $0x2a0] sm:$0xff]  ;;  %v3228_v58 = vcombine.low %v1932_v52, %v1936_v53  ;;  %v1885_v53 = vld [vmem:[#allocation13 + $0xc8] sm:$0xff] }
 0x677   :  { %2772 = vmatprep.subr.bf16.mxu0 %v3241_v60  ;;  %v1948_v60 = vld [vmem:[#allocation13 + $0x2c0] sm:$0xff] }
 0x678   :  { %1820 = vmatpush1.bf16.msra.mxu1 %v3658_v61  ;;  %2773 = vmatpush1.bf16.msra.mxu0 %v3240_v59  ;;  %v1950_v61 = vld [vmem:[#allocation13 + $0x2d0] sm:$0xff]  ;;  %v3237_v59 = vcombine.high %v1940_v56, %v1944_v57 }
 0x679   :  { %1821 = vmatprep.subr.bf16.mxu1 %v3663_v62  ;;  %v1954_v62 = vld [vmem:[#allocation13 + $0x2f0] sm:$0xff] }
 0x67c   :  { %1822 = vmatpush1.bf16.msra.mxu1 %v3661_v63  ;;  %v3248_v63 = vcombine.low %v1950_v61, %v1954_v62 }
 0x67d   :  { %1823 = vmatprep.subr.bf16.mxu1 %v3666_v0  ;;  %v3249_v0 = vcombine.high %v1950_v61, %v1954_v62  ;;  %v1952_v61 = vld [vmem:[#allocation13 + $0x2e0] sm:$0xff]  ;;  %v3236_v62 = vcombine.low %v1940_v56, %v1944_v57  ;;  %v1893_v57 = vld [vmem:[#allocation13 + $0x108] sm:$0xff] }
 0x67f   :  { %2774 = vmatprep.subr.bf16.mxu0 %v3249_v0  ;;  %v1956_v0 = vld [vmem:[#allocation13 + $0x300] sm:$0xff] }
 0x680   :  { %1824 = vmatpush1.bf16.msra.mxu1 %v3664_v1  ;;  %2775 = vmatpush1.bf16.msra.mxu0 %v3248_v63  ;;  %v1958_v1 = vld [vmem:[#allocation13 + $0x310] sm:$0xff]  ;;  %v3245_v63 = vcombine.high %v1948_v60, %v1952_v61 }
 0x681   :  { %1825 = vmatprep.subr.bf16.mxu1 %v3669_v2  ;;  %v1962_v2 = vld [vmem:[#allocation13 + $0x330] sm:$0xff] }
 0x684   :  { %1826 = vmatpush1.bf16.msra.mxu1 %v3667_v3  ;;  %v3256_v3 = vcombine.low %v1958_v1, %v1962_v2 }
 0x685   :  { %1827 = vmatprep.subr.bf16.mxu1 %v3672_v4  ;;  %v3257_v4 = vcombine.high %v1958_v1, %v1962_v2  ;;  %v1960_v1 = vld [vmem:[#allocation13 + $0x320] sm:$0xff]  ;;  %v3244_v2 = vcombine.low %v1948_v60, %v1952_v61  ;;  %v1901_v61 = vld [vmem:[#allocation13 + $0x148] sm:$0xff] }
 0x687   :  { %2776 = vmatprep.subr.bf16.mxu0 %v3257_v4  ;;  %v1964_v4 = vld [vmem:[#allocation13 + $0x340] sm:$0xff] }
 0x688   :  { %1828 = vmatpush1.bf16.msra.mxu1 %v3670_v5  ;;  %2777 = vmatpush1.bf16.msra.mxu0 %v3256_v3  ;;  %v1966_v5 = vld [vmem:[#allocation13 + $0x350] sm:$0xff]  ;;  %v3253_v3 = vcombine.high %v1956_v0, %v1960_v1 }
 0x689   :  { %1829 = vmatprep.subr.bf16.mxu1 %v3675_v6  ;;  %v1970_v6 = vld [vmem:[#allocation13 + $0x370] sm:$0xff] }
 0x68a   :  { %v3265_v8 = vcombine.high %v1966_v5, %v1970_v6 }
 0x68c   :  { %1830 = vmatpush1.bf16.msra.mxu1 %v3673_v7  ;;  %v3264_v7 = vcombine.low %v1966_v5, %v1970_v6  ;;  %2778 = vmatprep.subr.bf16.mxu0 %v3265_v8  ;;  %v1968_v5 = vld [vmem:[#allocation13 + $0x360] sm:$0xff]  ;;  %v3252_v6 = vcombine.low %v1956_v0, %v1960_v1  ;;  %v1909_v1 = vld [vmem:[#allocation13 + $0x188] sm:$0xff] }
 0x68d   :  { %2670 = vmatprep.subr.bf16.mxu1 %v3157_v13  ;;  %v3134_v13 = vld [vmem:[%s4382_s13] ss:$0 sm:$0xff]  ;;  %v3260_v8 = vcombine.low %v1964_v4, %v1968_v5 }
 0x68e   :  { %2779 = vmatpush1.bf16.msra.mxu0 %v3264_v7  ;;  %v3261_v7 = vcombine.high %v1964_v4, %v1968_v5  ;;  %v1917_v5 = vld [vmem:[#allocation13 + $0x1c8] sm:$0xff] }
 0x742   :  { %v1699_v14 = vpop.f32.mrb[16].mxu1 }
 0x743   :  { %v1700_v15 = vadd.f32 %v3134_v13, %v1699_v14  ;;  %v3390_v17 = vpop.f32.mrb[17].mxu1  ;;  %v1972_v13 = vld [vmem:[#allocation13 + $0x380] sm:$0xff] }
 0x744   :  { %v1702_v18 = vpop.f32.mrb[18].mxu1  ;;  %v1976_v14 = vld [vmem:[#allocation13 + $0x3a0] sm:$0xff]  ;;  %v1974_v17 = vld [vmem:[#allocation13 + $0x390] sm:$0xff] }
 0x745   :  { %v1705_v21 = vmax.f32 %v1700_v15, 0.0  ;;  %v3391_v22 = vpop.f32.mrb[19].mxu1  ;;  %v3269_v15 = vcombine.high %v1972_v13, %v1976_v14  ;;  %v1978_v18 = vld [vmem:[#allocation13 + $0x3b0] sm:$0xff]  ;;  %v3268_v19 = vcombine.low %v1972_v13, %v1976_v14  ;;  %v1925_v13 = vld [vmem:[#allocation13 + $0x208] sm:$0xff] }
 0x746   :  { %v3273_v20 = vcombine.high %v1974_v17, %v1978_v18  ;;  %v1980_v22 = vld [vmem:[#allocation13 + $0x3c0] sm:$0xff]  ;;  %v1929_v14 = vld [vmem:[#allocation13 + $0x228] sm:$0xff] }
 0x747   :  { %v1706_v23 = vpack.c.bf16 %v1705_v21, %v1705_v21  ;;  %v3272_v21 = vcombine.low %v1974_v17, %v1978_v18  ;;  %v3223_v17 = vcombine.high %v1925_v13, %v1929_v14  ;;  %v1933_v18 = vld [vmem:[#allocation13 + $0x248] sm:$0xff] }
 0x748   :  { %2780 = vmatprep.subr.bf16.mxu0 %v3273_v20  ;;  %v3222_v20 = vcombine.low %v1925_v13, %v1929_v14  ;;  %v1919_v14 = vld [vmem:[#allocation13 + $0x1d8] sm:$0xff] }
 0x749   :  { %1848 = vmatmul.mubr.bf16.vlgmr.msra.gmra.mrb[20].mxu1 %v1706_v23  ;;  %v1984_v23 = vld [vmem:[#allocation13 + $0x3e0] sm:$0xff]  ;;  %2781 = vmatpush1.bf16.msra.mxu0 %v3272_v21 }
 0x74a   :  { %2671 = vmatpush1.bf16.msra.mxu1 %v3156_v11  ;;  %v1908_v11 = vld [vmem:[#allocation13 + $0x180] sm:$0xff] }
 0x74b   :  { %2672 = vmatprep.subr.bf16.mxu1 %v3165_v24  ;;  %v3205_v44 = vcombine.high %v1908_v11, %v1912_v39  ;;  %v3204_v47 = vcombine.low %v1908_v11, %v1912_v39  ;;  %v3277_v24 = vcombine.high %v1980_v22, %v1984_v23 }
 0x74e   :  { %2673 = vmatpush1.bf16.msra.mxu1 %v3164_v27  ;;  %v3276_v27 = vcombine.low %v1980_v22, %v1984_v23  ;;  %v1941_v22 = vld [vmem:[#allocation13 + $0x288] sm:$0xff] }
 0x74f   :  { %2674 = vmatprep.subr.bf16.mxu1 %v3173_v28  ;;  %v3281_v28 = vcombine.high %v1982_v25, %v1986_v26  ;;  %v1945_v23 = vld [vmem:[#allocation13 + $0x2a8] sm:$0xff] }
 0x750   :  { %v3239_v25 = vcombine.high %v1941_v22, %v1945_v23  ;;  %v1949_v26 = vld [vmem:[#allocation13 + $0x2c8] sm:$0xff] }
 0x751   :  { %2782 = vmatprep.subr.bf16.mxu0 %v3281_v28  ;;  %v3238_v28 = vcombine.low %v1941_v22, %v1945_v23  ;;  %v1935_v23 = vld [vmem:[#allocation13 + $0x258] sm:$0xff] }
 0x752   :  { %2675 = vmatpush1.bf16.msra.mxu1 %v3172_v31  ;;  %v1865_v31 = vld [vmem:[#allocation13 + $0x28] sm:$0xff]  ;;  %2783 = vmatpush1.bf16.msra.mxu0 %v3280_v29 }
 0x753   :  { %2676 = vmatprep.subr.bf16.mxu1 %v3181_v32  ;;  %v3159_v32 = vcombine.high %v1861_v30, %v1865_v31  ;;  %v3158_v33 = vcombine.low %v1861_v30, %v1865_v31  ;;  %v1957_v30 = vld [vmem:[#allocation13 + $0x308] sm:$0xff] }
 0x754   :  { %v1961_v31 = vld [vmem:[#allocation13 + $0x328] sm:$0xff] }
 0x756   :  { %2677 = vmatpush1.bf16.msra.mxu1 %v3180_v35  ;;  %v1728_v35 = vrot.slane %v1723_v34, %v4215_v41 }
 0x757   :  { %2678 = vmatprep.subr.bf16.mxu1 %v3189_v36  ;;  %v1732_v36 = vrot.slane %v1723_v34, %v4218_v43  ;;  %v1965_v34 = vld [vmem:[#allocation13 + $0x348] sm:$0xff] }
 0x75a   :  { %2679 = vmatpush1.bf16.msra.mxu1 %v3188_v9 }
 0x75b   :  { %2680 = vmatprep.subr.bf16.mxu1 %v3197_v10 }
 0x75e   :  { %2681 = vmatpush1.bf16.msra.mxu1 %v3196_v42 }
 0x75f   :  { %2682 = vmatprep.subr.bf16.mxu1 %v3205_v44 }
 0x762   :  { %2683 = vmatpush1.bf16.msra.mxu1 %v3204_v47 }
 0x763   :  { %2684 = vmatprep.subr.bf16.mxu1 %v3213_v48 }
 0x766   :  { %2685 = vmatpush1.bf16.msra.mxu1 %v3212_v50  ;;  %v1881_v50 = vld [vmem:[#allocation13 + $0xa8] sm:$0xff] }
 0x767   :  { %2686 = vmatprep.subr.bf16.mxu1 %v3221_v51  ;;  %v3166_v51 = vcombine.low %v1869_v45, %v1873_v46  ;;  %v3175_v52 = vcombine.high %v1877_v40, %v1881_v50  ;;  %v1863_v46 = vld [vmem:[#allocation13 + $0x18] sm:$0xff] }
 0x76a   :  { %2687 = vmatpush1.bf16.msra.mxu1 %v3220_v54  ;;  %v1889_v54 = vld [vmem:[#allocation13 + $0xe8] sm:$0xff] }
 0x76b   :  { %2688 = vmatprep.subr.bf16.mxu1 %v3229_v55  ;;  %v3174_v55 = vcombine.low %v1877_v40, %v1881_v50  ;;  %v3183_v56 = vcombine.high %v1885_v53, %v1889_v54 }
 0x76e   :  { %2689 = vmatpush1.bf16.msra.mxu1 %v3228_v58  ;;  %v1897_v58 = vld [vmem:[#allocation13 + $0x128] sm:$0xff] }
 0x76f   :  { %2690 = vmatprep.subr.bf16.mxu1 %v3237_v59  ;;  %v3182_v59 = vcombine.low %v1885_v53, %v1889_v54  ;;  %v3191_v60 = vcombine.high %v1893_v57, %v1897_v58 }
 0x772   :  { %2691 = vmatpush1.bf16.msra.mxu1 %v3236_v62  ;;  %v1905_v62 = vld [vmem:[#allocation13 + $0x168] sm:$0xff] }
 0x773   :  { %2692 = vmatprep.subr.bf16.mxu1 %v3245_v63  ;;  %v3190_v63 = vcombine.low %v1893_v57, %v1897_v58  ;;  %v3199_v0 = vcombine.high %v1901_v61, %v1905_v62 }
 0x776   :  { %2693 = vmatpush1.bf16.msra.mxu1 %v3244_v2  ;;  %v1913_v2 = vld [vmem:[#allocation13 + $0x1a8] sm:$0xff] }
 0x777   :  { %2694 = vmatprep.subr.bf16.mxu1 %v3253_v3  ;;  %v3198_v3 = vcombine.low %v1901_v61, %v1905_v62  ;;  %v3207_v4 = vcombine.high %v1909_v1, %v1913_v2 }
 0x77a   :  { %2695 = vmatpush1.bf16.msra.mxu1 %v3252_v6  ;;  %v1921_v6 = vld [vmem:[#allocation13 + $0x1e8] sm:$0xff] }
 0x77b   :  { %2696 = vmatprep.subr.bf16.mxu1 %v3261_v7  ;;  %v3206_v7 = vcombine.low %v1909_v1, %v1913_v2 }
 0x77e   :  { %2697 = vmatpush1.bf16.msra.mxu1 %v3260_v8  ;;  %v3215_v8 = vcombine.high %v1917_v5, %v1921_v6 }
 0x77f   :  { %2698 = vmatprep.subr.bf16.mxu1 %v3269_v15  ;;  %v3214_v15 = vcombine.low %v1917_v5, %v1921_v6  ;;  %v1911_v6 = vld [vmem:[#allocation13 + $0x198] sm:$0xff] }
 0x782   :  { %2699 = vmatpush1.bf16.msra.mxu1 %v3268_v19  ;;  %v1937_v19 = vld [vmem:[#allocation13 + $0x268] sm:$0xff] }
 0x783   :  { %2700 = vmatprep.subr.bf16.mxu1 %v3277_v24  ;;  %v3231_v21 = vcombine.high %v1933_v18, %v1937_v19  ;;  %v3230_v24 = vcombine.low %v1933_v18, %v1937_v19  ;;  %v1927_v19 = vld [vmem:[#allocation13 + $0x218] sm:$0xff] }
 0x786   :  { %2701 = vmatpush1.bf16.msra.mxu1 %v3276_v27  ;;  %v1953_v27 = vld [vmem:[#allocation13 + $0x2e8] sm:$0xff] }
 0x787   :  { %2711 = vmatprep.subr.bf16.mxu1 %v3159_v32  ;;  %v3247_v29 = vcombine.high %v1949_v26, %v1953_v27  ;;  %v3246_v32 = vcombine.low %v1949_v26, %v1953_v27  ;;  %v1943_v27 = vld [vmem:[#allocation13 + $0x298] sm:$0xff] }
 0x81c   :  { %v1849_v37 = vpop.f32.mrb[20].mxu1 }
 0x81d   :  { %v1850_v38 = vadd.f32 %v1849_v37, %v1728_v35  ;;  %v1851_v9 = vpop.f32.mrb[21].mxu1  ;;  %v1969_v35 = vld [vmem:[#allocation13 + $0x368] sm:$0xff] }
 0x81e   :  { %v1852_v10 = vadd.f32 %v1851_v9, %v1732_v36  ;;  %v1853_v11 = vpop.f32.mrb[22].mxu1  ;;  %v3254_v36 = vcombine.low %v1957_v30, %v1961_v31  ;;  %v3263_v37 = vcombine.high %v1965_v34, %v1969_v35  ;;  %v1977_v9 = vld [vmem:[#allocation13 + $0x3a8] sm:$0xff] }
 0x81f   :  { %v1856_v39 = vmax.f32 %v1850_v38, 0.0  ;;  %v1854_v42 = vpop.f32.mrb[23].mxu1  ;;  %v1973_v38 = vld [vmem:[#allocation13 + $0x388] sm:$0xff] }
 0x820   :  { %v1857_v44 = vmax.f32 %v1852_v10, 0.0  ;;  %v3262_v10 = vcombine.low %v1965_v34, %v1969_v35  ;;  %v3271_v11 = vcombine.high %v1973_v38, %v1977_v9  ;;  %v1985_v42 = vld [vmem:[#allocation13 + $0x3e8] sm:$0xff]  ;;  %v1959_v35 = vld [vmem:[#allocation13 + $0x318] sm:$0xff] }
 0x821   :  { %v4329_v48 = vpack.c.bf16 %v1856_v39, %v1856_v39  ;;  %v1981_v39 = vld [vmem:[#allocation13 + $0x3c8] sm:$0xff] }
 0x822   :  { %v4327_v47 = vpack.c.bf16 %v1857_v44, %v1857_v44  ;;  %v3270_v44 = vcombine.low %v1973_v38, %v1977_v9  ;;  %v3279_v45 = vcombine.high %v1981_v39, %v1985_v42  ;;  %v3278_v40 = vcombine.low %v1981_v39, %v1985_v42  ;;  %v1967_v9 = vld [vmem:[#allocation13 + $0x358] sm:$0xff] }
 0x823   :  { %v1975_v42 = vld [vmem:[#allocation13 + $0x398] sm:$0xff] }
 0x824   :  { %2702 = vmatprep.mubr.bf16.mxu1 %v4327_v47  ;;  %2784 = vmatprep.mubr.bf16.mxu0 %v4327_v47 }
 0x825   :  { %2703 = vmatmul.mubr.bf16.vlgmr.msra.gmra.mrb[24].mxu1 %v4329_v48  ;;  %2785 = vmatmul.mubr.bf16.vlgmr.msra.gmra.mrb[4].mxu0 %v4329_v48 }
 0x826   :  { %2712 = vmatpush1.bf16.msra.mxu1 %v3158_v33  ;;  %2743 = vmatprep.mubr.bf16.mxu1 %v4327_v47  ;;  %v3255_v33 = vcombine.high %v1957_v30, %v1961_v31  ;;  %v1951_v31 = vld [vmem:[#allocation13 + $0x2d8] sm:$0xff] }
 0x827   :  { %2713 = vmatprep.subr.bf16.mxu1 %v3167_v49  ;;  %v1867_v49 = vld [vmem:[#allocation13 + $0x38] sm:$0xff] }
 0x828   :  { %v3163_v50 = vcombine.high %v1863_v46, %v1867_v49  ;;  %v3162_v53 = vcombine.low %v1863_v46, %v1867_v49  ;;  %v1983_v49 = vld [vmem:[#allocation13 + $0x3d8] sm:$0xff] }
 0x82a   :  { %2714 = vmatpush1.bf16.msra.mxu1 %v3166_v51  ;;  %v1871_v51 = vld [vmem:[#allocation13 + $0x58] sm:$0xff] }
 0x82b   :  { %2715 = vmatprep.subr.bf16.mxu1 %v3175_v52  ;;  %v1875_v52 = vld [vmem:[#allocation13 + $0x78] sm:$0xff] }
 0x82c   :  { %v3171_v54 = vcombine.high %v1871_v51, %v1875_v52  ;;  %v3170_v57 = vcombine.low %v1871_v51, %v1875_v52 }
 0x82e   :  { %2716 = vmatpush1.bf16.msra.mxu1 %v3174_v55  ;;  %v1879_v55 = vld [vmem:[#allocation13 + $0x98] sm:$0xff] }
 0x82f   :  { %2717 = vmatprep.subr.bf16.mxu1 %v3183_v56  ;;  %v1883_v56 = vld [vmem:[#allocation13 + $0xb8] sm:$0xff] }
 0x830   :  { %v3179_v58 = vcombine.high %v1879_v55, %v1883_v56  ;;  %v3178_v61 = vcombine.low %v1879_v55, %v1883_v56  ;;  %v2012_v55 = vsub.s32 5, %v4126_v12 }
 0x832   :  { %2718 = vmatpush1.bf16.msra.mxu1 %v3182_v59  ;;  %v1887_v59 = vld [vmem:[#allocation13 + $0xd8] sm:$0xff] }
 0x833   :  { %2719 = vmatprep.subr.bf16.mxu1 %v3191_v60  ;;  %v1891_v60 = vld [vmem:[#allocation13 + $0xf8] sm:$0xff] }
 0x834   :  { %v3187_v62 = vcombine.high %v1887_v59, %v1891_v60  ;;  %v3186_v1 = vcombine.low %v1887_v59, %v1891_v60 }
 0x836   :  { %2720 = vmatpush1.bf16.msra.mxu1 %v3190_v63  ;;  %v1895_v63 = vld [vmem:[#allocation13 + $0x118] sm:$0xff] }
 0x837   :  { %2721 = vmatprep.subr.bf16.mxu1 %v3199_v0  ;;  %v1899_v0 = vld [vmem:[#allocation13 + $0x138] sm:$0xff] }
 0x838   :  { %v3195_v2 = vcombine.high %v1895_v63, %v1899_v0  ;;  %v3194_v5 = vcombine.low %v1895_v63, %v1899_v0 }
 0x83a   :  { %2722 = vmatpush1.bf16.msra.mxu1 %v3198_v3  ;;  %v1903_v3 = vld [vmem:[#allocation13 + $0x158] sm:$0xff] }
 0x83b   :  { %2723 = vmatprep.subr.bf16.mxu1 %v3207_v4  ;;  %v1907_v4 = vld [vmem:[#allocation13 + $0x178] sm:$0xff] }
 0x83e   :  { %2724 = vmatpush1.bf16.msra.mxu1 %v3206_v7  ;;  %v1915_v7 = vld [vmem:[#allocation13 + $0x1b8] sm:$0xff] }
 0x83f   :  { %2725 = vmatprep.subr.bf16.mxu1 %v3215_v8  ;;  %v3202_v8 = vcombine.low %v1903_v3, %v1907_v4  ;;  %v3211_v13 = vcombine.high %v1911_v6, %v1915_v7 }
 0x842   :  { %2726 = vmatpush1.bf16.msra.mxu1 %v3214_v15  ;;  %v1923_v15 = vld [vmem:[#allocation13 + $0x1f8] sm:$0xff] }
 0x843   :  { %2727 = vmatprep.subr.bf16.mxu1 %v3223_v17  ;;  %v3210_v17 = vcombine.low %v1911_v6, %v1915_v7  ;;  %v3219_v18 = vcombine.high %v1919_v14, %v1923_v15 }
 0x846   :  { %2728 = vmatpush1.bf16.msra.mxu1 %v3222_v20  ;;  %v1931_v20 = vld [vmem:[#allocation13 + $0x238] sm:$0xff] }
 0x847   :  { %2729 = vmatprep.subr.bf16.mxu1 %v3231_v21  ;;  %v3218_v21 = vcombine.low %v1919_v14, %v1923_v15  ;;  %v3227_v22 = vcombine.high %v1927_v19, %v1931_v20 }
 0x84a   :  { %2730 = vmatpush1.bf16.msra.mxu1 %v3230_v24  ;;  %v1939_v24 = vld [vmem:[#allocation13 + $0x278] sm:$0xff] }
 0x84b   :  { %2731 = vmatprep.subr.bf16.mxu1 %v3239_v25  ;;  %v3226_v25 = vcombine.low %v1927_v19, %v1931_v20  ;;  %v3235_v26 = vcombine.high %v1935_v23, %v1939_v24 }
 0x84e   :  { %2732 = vmatpush1.bf16.msra.mxu1 %v3238_v28  ;;  %v1947_v28 = vld [vmem:[#allocation13 + $0x2b8] sm:$0xff] }
 0x84f   :  { %2733 = vmatprep.subr.bf16.mxu1 %v3247_v29  ;;  %v3234_v29 = vcombine.low %v1935_v23, %v1939_v24  ;;  %v3243_v30 = vcombine.high %v1943_v27, %v1947_v28 }
 0x852   :  { %2734 = vmatpush1.bf16.msra.mxu1 %v3246_v32  ;;  %v1955_v32 = vld [vmem:[#allocation13 + $0x2f8] sm:$0xff] }
 0x853   :  { %2735 = vmatprep.subr.bf16.mxu1 %v3255_v33  ;;  %v3242_v33 = vcombine.low %v1943_v27, %v1947_v28  ;;  %v3251_v34 = vcombine.high %v1951_v31, %v1955_v32  ;;  %v2000_v27 = vsub.s32 2, %v4126_v12  ;;  %v2004_v28 = vsub.s32 3, %v4126_v12 }
 0x856   :  { %2736 = vmatpush1.bf16.msra.mxu1 %v3254_v36  ;;  %v1963_v36 = vld [vmem:[#allocation13 + $0x338] sm:$0xff] }
 0x857   :  { %2737 = vmatprep.subr.bf16.mxu1 %v3263_v37  ;;  %v3250_v37 = vcombine.low %v1951_v31, %v1955_v32  ;;  %v3259_v38 = vcombine.high %v1959_v35, %v1963_v36 }
 0x85a   :  { %2738 = vmatpush1.bf16.msra.mxu1 %v3262_v10  ;;  %v1971_v10 = vld [vmem:[#allocation13 + $0x378] sm:$0xff] }
 0x85b   :  { %2739 = vmatprep.subr.bf16.mxu1 %v3271_v11  ;;  %v3258_v11 = vcombine.low %v1959_v35, %v1963_v36  ;;  %v3267_v39 = vcombine.high %v1967_v9, %v1971_v10 }
 0x85e   :  { %2740 = vmatpush1.bf16.msra.mxu1 %v3270_v44  ;;  %v1979_v44 = vld [vmem:[#allocation13 + $0x3b8] sm:$0xff] }
 0x85f   :  { %2741 = vmatprep.subr.bf16.mxu1 %v3279_v45  ;;  %v3266_v45 = vcombine.low %v1967_v9, %v1971_v10  ;;  %v3275_v46 = vcombine.high %v1975_v42, %v1979_v44 }
 0x862   :  { %2742 = vmatpush1.bf16.msra.mxu1 %v3278_v40  ;;  %v1987_v40 = vld [vmem:[#allocation13 + $0x3f8] sm:$0xff] }
 0x863   :  { %2793 = vmatprep.subr.bf16.mxu1 %v3163_v50  ;;  %v3274_v50 = vcombine.low %v1975_v42, %v1979_v44  ;;  %v3283_v51 = vcombine.high %v1983_v49, %v1987_v40  ;;  %v3282_v52 = vcombine.low %v1983_v49, %v1987_v40 }
 0x865   :  { %2744 = vmatmul.mubr.bf16.vlgmr.msra.gmra.mrb[28].mxu1 %v4329_v48 }
 0x866   :  { %2794 = vmatpush1.bf16.msra.mxu1 %v3162_v53  ;;  %2825 = vmatprep.mubr.bf16.mxu1 %v4327_v47  ;;  %v3203_v47 = vcombine.high %v1903_v3, %v1907_v4  ;;  %v2008_v53 = vsub.s32 4, %v4126_v12 }
 0x867   :  { %2795 = vmatprep.subr.bf16.mxu1 %v3171_v54  ;;  %v4343_v54 = vld [vmem:[%s4386_s17] sm:$0xff] }
 0x868   :  { %v1993_v56 = vrot.slane %v4343_v54, %v4215_v41  ;;  %v2013_v59 = vrot.slane %v4343_v54, %v2012_v55 }
 0x86a   :  { %2796 = vmatpush1.bf16.msra.mxu1 %v3170_v57  ;;  %v2009_v57 = vrot.slane %v4343_v54, %v2008_v53 }
 0x86b   :  { %2797 = vmatprep.subr.bf16.mxu1 %v3179_v58  ;;  %v1997_v58 = vrot.slane %v4343_v54, %v4218_v43 }
 0x86e   :  { %2798 = vmatpush1.bf16.msra.mxu1 %v3178_v61 }
 0x86f   :  { %2799 = vmatprep.subr.bf16.mxu1 %v3187_v62 }
 0x872   :  { %2800 = vmatpush1.bf16.msra.mxu1 %v3186_v1 }
 0x873   :  { %2801 = vmatprep.subr.bf16.mxu1 %v3195_v2 }
 0x876   :  { %2802 = vmatpush1.bf16.msra.mxu1 %v3194_v5 }
 0x877   :  { %2803 = vmatprep.subr.bf16.mxu1 %v3203_v47 }
 0x87a   :  { %2804 = vmatpush1.bf16.msra.mxu1 %v3202_v8 }
 0x87b   :  { %2805 = vmatprep.subr.bf16.mxu1 %v3211_v13 }
 0x87e   :  { %2806 = vmatpush1.bf16.msra.mxu1 %v3210_v17 }
 0x87f   :  { %2807 = vmatprep.subr.bf16.mxu1 %v3219_v18 }
 0x882   :  { %2808 = vmatpush1.bf16.msra.mxu1 %v3218_v21 }
 0x883   :  { %2809 = vmatprep.subr.bf16.mxu1 %v3227_v22 }
 0x886   :  { %2810 = vmatpush1.bf16.msra.mxu1 %v3226_v25 }
 0x887   :  { %2811 = vmatprep.subr.bf16.mxu1 %v3235_v26 }
 0x88a   :  { %2812 = vmatpush1.bf16.msra.mxu1 %v3234_v29  ;;  %v2001_v29 = vrot.slane %v4343_v54, %v2000_v27 }
 0x88b   :  { %2813 = vmatprep.subr.bf16.mxu1 %v3243_v30  ;;  %v2005_v30 = vrot.slane %v4343_v54, %v2004_v28 }
 0x88e   :  { %2814 = vmatpush1.bf16.msra.mxu1 %v3242_v33 }
 0x88f   :  { %2815 = vmatprep.subr.bf16.mxu1 %v3251_v34 }
 0x892   :  { %2816 = vmatpush1.bf16.msra.mxu1 %v3250_v37 }
 0x893   :  { %2817 = vmatprep.subr.bf16.mxu1 %v3259_v38 }
 0x896   :  { %2818 = vmatpush1.bf16.msra.mxu1 %v3258_v11 }
 0x897   :  { %2819 = vmatprep.subr.bf16.mxu1 %v3267_v39 }
 0x89a   :  { %2820 = vmatpush1.bf16.msra.mxu1 %v3266_v45 }
 0x89b   :  { %2821 = vmatprep.subr.bf16.mxu1 %v3275_v46 }
 0x89e   :  { %2822 = vmatpush1.bf16.msra.mxu1 %v3274_v50  ;;  %v2016_v50 = vsub.s32 6, %v4126_v12 }
 0x89f   :  { %2823 = vmatprep.subr.bf16.mxu1 %v3283_v51  ;;  %v2020_v51 = vsub.s32 7, %v4126_v12 }
 0x8a1   :  { %v2021_v53 = vrot.slane %v4343_v54, %v2020_v51 }
 0x8a2   :  { %2824 = vmatpush1.bf16.msra.mxu1 %v3282_v52  ;;  %v2017_v52 = vrot.slane %v4343_v54, %v2016_v50 }
 0x8a5   :  { %2826 = vmatmul.mubr.bf16.vlgmr.msra.gmra.mrb[32].mxu1 %v4329_v48 }
 0x8f8   :  { %v2704_v48 = vpop.f32.mrb[24].mxu1  ;;  %v2786_v60 = vpop.f32.mrb[4].mxu0 }
 0x8f9   :  { %v2705_v61 = vadd.f32 %v2704_v48, %v1993_v56  ;;  %v2787_v62 = vadd.f32 %v2786_v60, %v2009_v57  ;;  %v2706_v63 = vpop.f32.mrb[25].mxu1  ;;  %v2788_v0 = vpop.f32.mrb[5].mxu0 }
 0x8fa   :  { %v2707_v1 = vadd.f32 %v2706_v63, %v1997_v58  ;;  %v2789_v2 = vadd.f32 %v2788_v0, %v2013_v59  ;;  %v2708_v3 = vpop.f32.mrb[26].mxu1  ;;  %v2790_v4 = vpop.f32.mrb[6].mxu0 }
 0x8fb   :  { %v3284_v5 = vmul.f32 -1.442695, %v2705_v61  ;;  %v3288_v47 = vmul.f32 -1.442695, %v2787_v62  ;;  %v2709_v41 = vpop.f32.mrb[27].mxu1  ;;  %v2791_v6 = vpop.f32.mrb[7].mxu0 }
 0x8fc   :  { %v3285_v7 = vmul.f32 -1.442695, %v2707_v1  ;;  %v3289_v8 = vmul.f32 -1.442695, %v2789_v2 }
 0x8fd   :  { %3678 = vpow2.f32 %v3284_v5 }
 0x8fe   :  { %3680 = vpow2.f32 %v3288_v47 }
 0x8ff   :  { %3682 = vpow2.f32 %v3285_v7 }
 0x900   :  { %3684 = vpow2.f32 %v3289_v8 }
 0x907   :  { %v3679_v43 = vpop.eup %3678 }
 0x908   :  { %v3681_v13 = vpop.eup %3680  ;;  %v2858_v14 = vadd.f32 1.0, %v3679_v43 }
 0x909   :  { %v3683_v15 = vpop.eup %3682  ;;  %v2862_v17 = vadd.f32 1.0, %v3681_v13 }
 0x90a   :  { %v3685_v18 = vpop.eup %3684  ;;  %3686 = vrcp.f32 %v2858_v14  ;;  %v2859_v19 = vadd.f32 1.0, %v3683_v15 }
 0x90b   :  { %3688 = vrcp.f32 %v2862_v17  ;;  %v2863_v20 = vadd.f32 1.0, %v3685_v18 }
 0x90c   :  { %3690 = vrcp.f32 %v2859_v19 }
 0x90d   :  { %3692 = vrcp.f32 %v2863_v20 }
 0x914   :  { %v3687_v21 = vpop.eup %3686 }
 0x915   :  { %v3689_v22 = vpop.eup %3688 }
 0x916   :  { %v3691_v23 = vpop.eup %3690 }
 0x917   :  { %v3693_v24 = vpop.eup %3692  ;;  %v3292_v25 = vpack.c.bf16 %v3691_v23, %v3687_v21 }
 0x918   :  { %v3294_v26 = vpack.c.bf16 %v3693_v24, %v3689_v22 }
 0x919   :  { %v2908_v46 = vrot.slane %v3292_v25, %v4129_v16 }
 0x91a   :  { %v2922_v54 = vrot.slane %v3294_v26, %v4129_v16 }
 0x938   :  { %v2745_v31 = vpop.f32.mrb[28].mxu1 }
 0x939   :  { %v2746_v32 = vadd.f32 %v2745_v31, %v2001_v29  ;;  %v2747_v33 = vpop.f32.mrb[29].mxu1 }
 0x93a   :  { %v2748_v34 = vadd.f32 %v2747_v33, %v2005_v30  ;;  %v2749_v35 = vpop.f32.mrb[30].mxu1 }
 0x93b   :  { %v3286_v36 = vmul.f32 -1.442695, %v2746_v32  ;;  %v2750_v37 = vpop.f32.mrb[31].mxu1 }
 0x93c   :  { %v3287_v38 = vmul.f32 -1.442695, %v2748_v34 }
 0x93d   :  { %3694 = vpow2.f32 %v3286_v36 }
 0x93e   :  { %3696 = vpow2.f32 %v3287_v38 }
 0x947   :  { %v3695_v9 = vpop.eup %3694 }
 0x948   :  { %v3697_v10 = vpop.eup %3696  ;;  %v2860_v11 = vadd.f32 1.0, %v3695_v9 }
 0x949   :  { %v2861_v39 = vadd.f32 1.0, %v3697_v10 }
 0x94a   :  { %3698 = vrcp.f32 %v2860_v11 }
 0x94b   :  { %3700 = vrcp.f32 %v2861_v39 }
 0x954   :  { %v3699_v42 = vpop.eup %3698 }
 0x955   :  { %v3701_v44 = vpop.eup %3700 }
 0x956   :  { %v3293_v45 = vpack.c.bf16 %v3701_v44, %v3699_v42 }
 0x958   :  { %v2915_v49 = vrot.slane %v3293_v45, %v4129_v16 }
 0x95a   :  { %v2930_v40 = vcombine.low %v2908_v46, %v2915_v49 }
 0x95c   :  { %v2938_v47 = vrot.slane %v2930_v40, %v4129_v16 }
 0x978   :  { %v2827_v55 = vpop.f32.mrb[32].mxu1 }
 0x979   :  { %v2828_v56 = vadd.f32 %v2827_v55, %v2017_v52  ;;  %v2829_v57 = vpop.f32.mrb[33].mxu1 }
 0x97a   :  { %v2830_v58 = vadd.f32 %v2829_v57, %v2021_v53  ;;  %v2831_v59 = vpop.f32.mrb[34].mxu1 }
 0x97b   :  { %v3290_v48 = vmul.f32 -1.442695, %v2828_v56  ;;  %v2832_v60 = vpop.f32.mrb[35].mxu1 }
 0x97c   :  { %v3291_v61 = vmul.f32 -1.442695, %v2830_v58 }
 0x97d   :  { %3702 = vpow2.f32 %v3290_v48 }
 0x97e   :  { %3704 = vpow2.f32 %v3291_v61 }
 0x987   :  { %v3703_v62 = vpop.eup %3702 }
 0x988   :  { %v3705_v63 = vpop.eup %3704  ;;  %v2864_v0 = vadd.f32 1.0, %v3703_v62 }
 0x989   :  { %v2865_v1 = vadd.f32 1.0, %v3705_v63 }
 0x98a   :  { %3706 = vrcp.f32 %v2864_v0 }
 0x98b   :  { %3708 = vrcp.f32 %v2865_v1 }
 0x994   :  { %v3707_v12 = vpop.eup %3706 }
 0x995   :  { %v3709_v2 = vpop.eup %3708 }
 0x996   :  { %v3295_v3 = vpack.c.bf16 %v3709_v2, %v3707_v12 }
 0x998   :  { %v2929_v4 = vrot.slane %v3295_v3, %v4129_v16 }
 0x99a   :  { %v2931_v5 = vcombine.low %v2922_v54, %v2929_v4 }
 0x99c   :  { %v2945_v41 = vrot.slane %v2931_v5, %v4129_v16 }
 0x99e   :  { %v2946_v6 = vcombine.low %v2938_v47, %v2945_v41 }
 0x9a0   :  { %2948 = vst [vmem:[%s4387_s18] sm:$0xff] %v2946_v6 }
 0x9a1   :  { %2965 = vsyncpa [#allocation3], 1 }
 0x9a2   :  { %2966 = vsyncpa [#allocation5], 1 }
 0x9a3   :  { %2967 = vsyncpa [#allocation8], 1 }
 0x9a4   :  { %2968 = vsyncpa [#allocation11], 1 }
 0x9a5   :  { %2969 = vsyncpa [#allocation14], 1 }

</bundles_post_ra>
